<compile_context>
chip_gen: v5e
topology: v5e:2x2
jax: 0.10.0
libtpu: 0.0.40
codegen_flags: <defaults>
</compile_context>

<pallas_src>
import numpy as np
import jax
import jax.numpy as jnp
from jax.experimental import pallas as pl
from jax.experimental.pallas import tpu as pltpu

HIDDEN = 32          # hidden_dim (small test size; PyTorch default is 128)
GAP_LEN = 3
IN_FEATS = 6         # x has IN_FEATS + 2 columns (last 2 are categorical indices)
EMB = 4              # embedding dim for ship_type / nav_status


# ---------------------------------------------------------------------------
# Fused kernel:
#   1) 3 GCN layers   h = relu(Ahat @ (h @ W) + b)     (dropout = identity, eval)
#   2) in-kernel gap-node gather (one-hot selection matmul, indices from SMEM)
#   3) GAP_LEN unrolled steps of a 1-step bidirectional GRU (PyTorch gate
#      order r,z,n) + fused head-l1/reduce + head-l2, single lane-dense store.
# position_head of ShipGNN is dead code in this forward and is not computed.
# ---------------------------------------------------------------------------
def _fused_kernel(gap_ref,                      # SMEM (B,) int32
                  a_ref, x_ref,                 # bf16 [N,N], [N,F_pad]
                  w1_ref, b1_ref, w2_ref, b2_ref, w3_ref, b3_ref,
                  wih_ref, bih_ref,
                  whhf_ref, bhhf_ref, whhb_ref, bhhb_ref,
                  whrf_ref, whrb_ref, bhr_ref,
                  wh2_ref, bh2_ref,
                  o_ref):                       # f32 [B, GAP_LEN*2]
    H = HIDDEN
    B = o_ref.shape[0]
    n_pad = a_ref.shape[0]

    # ---------------- GCN: 3 fused layers (bf16 matmuls, f32 accum) --------
    a = a_ref[...]                                        # bf16 [N, N]

    def gcn_layer(h_bf16, w_ref, b_ref):
        hw = jnp.dot(h_bf16, w_ref[...], preferred_element_type=jnp.float32)
        agg = jnp.dot(a, hw.astype(jnp.bfloat16),
                      preferred_element_type=jnp.float32) + b_ref[...]
        return jnp.maximum(agg, 0.0)

    h = gcn_layer(x_ref[...], w1_ref, b1_ref)             # [N, H] f32
    h = gcn_layer(h.astype(jnp.bfloat16), w2_ref, b2_ref)
    h = gcn_layer(h.astype(jnp.bfloat16), w3_ref, b3_ref)

    # ------------- in-kernel gap-node gather (one-hot @ hidden) ------------
    lane_iota = jax.lax.broadcasted_iota(jnp.int32, (1, n_pad), 1)
    sel = jnp.concatenate(
        [(lane_iota == gap_ref[b]).astype(jnp.float32) for b in range(B)],
        axis=0)                                           # [B, N] one-hot
    h_gap = jnp.dot(sel, h, preferred_element_type=jnp.float32)   # [B, H] f32

    # ------------- decoder weights: hoisted once (no per-step reloads) -----
    w_ih = wih_ref[...]          # bf16 [H, 6H]   (fwd r,z,n | bwd r,z,n)
    b_ih = bih_ref[...]          # f32  [1, 6H]
    w_hh_f = whhf_ref[...]; b_hh_f = bhhf_ref[...]
    w_hh_b = whhb_ref[...]; b_hh_b = bhhb_ref[...]
    w_hr_f = whrf_ref[...]       # bf16 [H, 2H]   (head-l1 | reduce), fwd rows
    w_hr_b = whrb_ref[...]       # bf16 [H, 2H]   backward rows
    b_hr = bhr_ref[...]          # f32  [1, 2H]
    w_h2 = wh2_ref[...]; b_h2 = bh2_ref[...]

    def gru_half(gi, h_prev, w_hh, b_hh):
        # gi: [B, 3H] f32 (input gates, bias included); h_prev: [B, H] f32
        gh = jnp.dot(h_prev.astype(jnp.bfloat16), w_hh,
                     preferred_element_type=jnp.float32) + b_hh
        r = jax.nn.sigmoid(gi[:, 0:H] + gh[:, 0:H])
        z = jax.nn.sigmoid(gi[:, H:2 * H] + gh[:, H:2 * H])
        n = jnp.tanh(gi[:, 2 * H:3 * H] + r * gh[:, 2 * H:3 * H])
        return (1.0 - z) * n + z * h_prev

    x_in = h_gap                  # input_step = h_before_gap
    h_f = h_gap                   # h_t[0]
    h_b = h_gap                   # h_t[1]
    preds = []
    for _ in range(GAP_LEN):      # static unroll
        # one fused input-gate matmul for both GRU directions
        gi = jnp.dot(x_in.astype(jnp.bfloat16), w_ih,
                     preferred_element_type=jnp.float32) + b_ih       # [B, 6H]
        h_f = gru_half(gi[:, 0:3 * H], h_f, w_hh_f, b_hh_f)
        h_b = gru_half(gi[:, 3 * H:6 * H], h_b, w_hh_b, b_hh_b)
        # fused head-l1 + reduce, split contraction (no lane concat of h_f|h_b)
        g = (jnp.dot(h_f.astype(jnp.bfloat16), w_hr_f,
                     preferred_element_type=jnp.float32)
             + jnp.dot(h_b.astype(jnp.bfloat16), w_hr_b,
                       preferred_element_type=jnp.float32)
             + b_hr)                                                  # [B, 2H]
        hh = jnp.maximum(g[:, 0:H], 0.0)                              # head ReLU
        preds.append(jnp.dot(hh.astype(jnp.bfloat16), w_h2,
                             preferred_element_type=jnp.float32) + b_h2)  # [B,2]
        x_in = g[:, H:2 * H]                                          # reduce()

    # single lane-dense store: [B, GAP_LEN*2]
    o_ref[...] = jnp.concatenate(preds, axis=-1)


def fused_forward(gap_nodes, ahat_bf16, feat_bf16, kp):
    b = int(gap_nodes.shape[0])
    vmem = pl.BlockSpec(memory_space=pltpu.MemorySpace.VMEM)
    smem = pl.BlockSpec(memory_space=pltpu.MemorySpace.SMEM)
    return pl.pallas_call(
        _fused_kernel,
        out_shape=jax.ShapeDtypeStruct((b, GAP_LEN * 2), jnp.float32),
        in_specs=[smem] + [vmem] * 19,
        out_specs=vmem,
    )(gap_nodes, ahat_bf16, feat_bf16,
      kp["w1"], kp["b1"], kp["w2"], kp["b2"], kp["w3"], kp["b3"],
      kp["w_ih"], kp["b_ih"],
      kp["w_hh_f"], kp["b_hh_f"], kp["w_hh_b"], kp["b_hh_b"],
      kp["w_hr_f"], kp["w_hr_b"], kp["b_hr"],
      kp["w_h2"], kp["b_h2"])


# ---------------------------------------------------------------------------
# Glue
# ---------------------------------------------------------------------------
def build_ahat(edge_index, n):
    """GCNConv normalization: add self loops, D^{-1/2} (A+I) D^{-1/2}."""
    loops = jnp.arange(n, dtype=edge_index.dtype)
    src = jnp.concatenate([edge_index[0], loops])
    dst = jnp.concatenate([edge_index[1], loops])
    a = jnp.zeros((n, n), jnp.float32).at[dst, src].add(1.0)   # A[dst, src]
    deg = jnp.zeros((n,), jnp.float32).at[dst].add(1.0)
    dinv = jnp.where(deg > 0, 1.0 / jnp.sqrt(deg), 0.0)
    return a * dinv[:, None] * dinv[None, :]


def init_params(key):
    F = IN_FEATS + 2 * EMB
    H = HIDDEN
    ks = jax.random.split(key, 20)

    def xavier(k, shape):
        lim = float(np.sqrt(6.0 / (shape[0] + shape[1])))
        return jax.random.uniform(k, shape, jnp.float32, -lim, lim)

    s = float(1.0 / np.sqrt(H))

    def gru_u(k, shape):
        return jax.random.uniform(k, shape, jnp.float32, -s, s)

    p = {}
    p["ship_emb"] = jax.random.normal(ks[0], (10, EMB), jnp.float32)
    p["nav_emb"] = jax.random.normal(ks[1], (10, EMB), jnp.float32)
    # GCN layers (weights stored as [in, out] so kernel does x @ W)
    p["w1"] = xavier(ks[2], (F, H)); p["b1"] = jnp.zeros((1, H), jnp.float32)
    p["w2"] = xavier(ks[3], (H, H)); p["b2"] = jnp.zeros((1, H), jnp.float32)
    p["w3"] = xavier(ks[4], (H, H)); p["b3"] = jnp.zeros((1, H), jnp.float32)
    # Bidirectional GRU, PyTorch layout transposed to [in, 3H], gates (r,z,n)
    p["wih_f"] = gru_u(ks[5], (H, 3 * H)); p["whh_f"] = gru_u(ks[6], (H, 3 * H))
    p["bih_f"] = gru_u(ks[7], (1, 3 * H)); p["bhh_f"] = gru_u(ks[8], (1, 3 * H))
    p["wih_b"] = gru_u(ks[9], (H, 3 * H)); p["whh_b"] = gru_u(ks[10], (H, 3 * H))
    p["bih_b"] = gru_u(ks[11], (1, 3 * H)); p["bhh_b"] = gru_u(ks[12], (1, 3 * H))
    # reduce: Linear(2H -> H); head: Linear(2H -> H) -> ReLU -> Linear(H -> 2)
    p["w_red"] = xavier(ks[13], (2 * H, H)); p["b_red"] = jnp.zeros((1, H), jnp.float32)
    p["w_h1"] = xavier(ks[14], (2 * H, H)); p["b_h1"] = jnp.zeros((1, H), jnp.float32)
    p["w_h2"] = xavier(ks[15], (H, 2));     p["b_h2"] = jnp.zeros((1, 2), jnp.float32)
    return p


def prepare_kernel_params(p, f_pad):
    """One-time packing: pad W1, fuse GRU/head/reduce weights, cast matmul
    operands to bf16 (biases stay f32)."""
    H = HIDDEN
    bf = lambda a: a.astype(jnp.bfloat16)
    F = p["w1"].shape[0]
    kp = {}
    kp["w1"] = bf(jnp.pad(p["w1"], ((0, f_pad - F), (0, 0))))
    kp["b1"] = p["b1"]
    kp["w2"] = bf(p["w2"]); kp["b2"] = p["b2"]
    kp["w3"] = bf(p["w3"]); kp["b3"] = p["b3"]
    # fused input gates: [H, 6H] = [fwd r,z,n | bwd r,z,n]
    kp["w_ih"] = bf(jnp.concatenate([p["wih_f"], p["wih_b"]], axis=1))
    kp["b_ih"] = jnp.concatenate([p["bih_f"], p["bih_b"]], axis=1)
    kp["w_hh_f"] = bf(p["whh_f"]); kp["b_hh_f"] = p["bhh_f"]
    kp["w_hh_b"] = bf(p["whh_b"]); kp["b_hh_b"] = p["bhh_b"]
    # fused head-l1 | reduce ([2H, 2H]) then split contraction rows
    w_hr = jnp.concatenate([p["w_h1"], p["w_red"]], axis=1)       # [2H, 2H]
    kp["w_hr_f"] = bf(w_hr[:H, :])
    kp["w_hr_b"] = bf(w_hr[H:, :])
    kp["b_hr"] = jnp.concatenate([p["b_h1"], p["b_red"]], axis=1)  # [1, 2H]
    kp["w_h2"] = bf(p["w_h2"]); kp["b_h2"] = p["b_h2"]
    return kp


def ship_gnn_with_decoder_forward(params, x, edge_index, batch, gap_start_idx=4):
    n = x.shape[0]

    # Embedding lookups (gather kept in JAX glue).
    ship_idx = x[:, -2].astype(jnp.int32)
    nav_idx = x[:, -1].astype(jnp.int32)
    ship_e = jnp.take(params["ship_emb"], ship_idx, axis=0)
    nav_e = jnp.take(params["nav_emb"], nav_idx, axis=0)
    feat = jnp.concatenate([x[:, :-2], ship_e, nav_e], axis=1)   # [N, IN_FEATS+8]

    # Zero-pad feature dim to a multiple of 8 (doesn't change X @ W1).
    F = feat.shape[1]
    f_pad = ((F + 7) // 8) * 8
    feat_p = jnp.pad(feat, ((0, 0), (0, f_pad - F))).astype(jnp.bfloat16)

    ahat = build_ahat(edge_index, n).astype(jnp.bfloat16)
    kp = prepare_kernel_params(params, f_pad)

    # Gap-node selection indices (same semantics as bincount/offset loop).
    batch_np = np.asarray(batch)
    if batch_np.ndim == 0:
        gap_nodes = np.array([gap_start_idx])
    else:
        counts = np.bincount(batch_np)
        offsets = np.concatenate([[0], np.cumsum(counts)[:-1]])
        gap_nodes = offsets + gap_start_idx
    gap_nodes = jnp.asarray(gap_nodes, dtype=jnp.int32)
    b = int(gap_nodes.shape[0])

    out = fused_forward(gap_nodes, ahat, feat_p, kp)      # [B, GAP_LEN*2]
    return out.reshape(b, GAP_LEN, 2)                     # [B, gap_len, 2]


if __name__ == "__main__":
    key = jax.random.PRNGKey(0)
    pkey, xkey, ikey = jax.random.split(key, 3)
    params = init_params(pkey)

    n_per_graph, n_graphs = 8, 2
    n = n_per_graph * n_graphs

    cont = jax.random.normal(xkey, (n, IN_FEATS), jnp.float32)
    cats = jax.random.randint(ikey, (n, 2), 0, 10).astype(jnp.float32)
    x = jnp.concatenate([cont, cats], axis=1)          # [N, IN_FEATS + 2]

    # Bidirectional chain edges within each graph.
    src, dst = [], []
    for g in range(n_graphs):
        o = g * n_per_graph
        for i in range(n_per_graph - 1):
            src += [o + i, o + i + 1]
            dst += [o + i + 1, o + i]
    edge_index = jnp.asarray([src, dst], dtype=jnp.int32)
    batch = np.repeat(np.arange(n_graphs), n_per_graph).astype(np.int32)

    pred_seq = ship_gnn_with_decoder_forward(params, x, edge_index, batch,
                                             gap_start_idx=4)
    pred_seq = jax.block_until_ready(pred_seq)
    assert pred_seq.shape == (n_graphs, GAP_LEN, 2)
    assert bool(jnp.all(jnp.isfinite(pred_seq)))
    print("KERNEL_OK")
</pallas_src>

<mosaic_0001>
module attributes {stable_mosaic.version = 11 : i64} {
  func.func @_fused_kernel(%arg0: memref<2xi32, #tpu.memory_space<smem>>, %arg1: memref<16x16xbf16, #tpu.memory_space<vmem>>, %arg2: memref<16x16xbf16, #tpu.memory_space<vmem>>, %arg3: memref<16x32xbf16, #tpu.memory_space<vmem>>, %arg4: memref<1x32xf32, #tpu.memory_space<vmem>>, %arg5: memref<32x32xbf16, #tpu.memory_space<vmem>>, %arg6: memref<1x32xf32, #tpu.memory_space<vmem>>, %arg7: memref<32x32xbf16, #tpu.memory_space<vmem>>, %arg8: memref<1x32xf32, #tpu.memory_space<vmem>>, %arg9: memref<32x192xbf16, #tpu.memory_space<vmem>>, %arg10: memref<1x192xf32, #tpu.memory_space<vmem>>, %arg11: memref<32x96xbf16, #tpu.memory_space<vmem>>, %arg12: memref<1x96xf32, #tpu.memory_space<vmem>>, %arg13: memref<32x96xbf16, #tpu.memory_space<vmem>>, %arg14: memref<1x96xf32, #tpu.memory_space<vmem>>, %arg15: memref<32x64xbf16, #tpu.memory_space<vmem>>, %arg16: memref<32x64xbf16, #tpu.memory_space<vmem>>, %arg17: memref<1x64xf32, #tpu.memory_space<vmem>>, %arg18: memref<32x2xbf16, #tpu.memory_space<vmem>>, %arg19: memref<1x2xf32, #tpu.memory_space<vmem>>, %arg20: memref<2x6xf32, #tpu.memory_space<vmem>>) attributes {dimension_semantics = [], scalar_prefetch = 0 : i64, scratch_operands = 0 : i64, tpu.core_type = #tpu.core_type<tc>} {
    %c0 = arith.constant 0 : index
    %c0_0 = arith.constant 0 : index
    %0 = vector.load %arg1[%c0, %c0_0] : memref<16x16xbf16, #tpu.memory_space<vmem>>, vector<16x16xbf16>
    %c0_1 = arith.constant 0 : index
    %c0_2 = arith.constant 0 : index
    %1 = vector.load %arg2[%c0_1, %c0_2] : memref<16x16xbf16, #tpu.memory_space<vmem>>, vector<16x16xbf16>
    %c0_3 = arith.constant 0 : index
    %c0_4 = arith.constant 0 : index
    %2 = vector.load %arg3[%c0_3, %c0_4] : memref<16x32xbf16, #tpu.memory_space<vmem>>, vector<16x32xbf16>
    %cst = arith.constant dense<0.000000e+00> : vector<16x32xf32>
    %3 = tpu.matmul %1, %2, %cst {dimension_numbers = #tpu.dot_dimension_numbers<[1], [0], [0], [1], [0, 0, 1, 1], [], []>} : vector<16x16xbf16>, vector<16x32xbf16>, vector<16x32xf32> -> vector<16x32xf32>
    %4 = arith.truncf %3 : vector<16x32xf32> to vector<16x32xbf16>
    %cst_5 = arith.constant dense<0.000000e+00> : vector<16x32xf32>
    %5 = tpu.matmul %0, %4, %cst_5 {dimension_numbers = #tpu.dot_dimension_numbers<[1], [0], [0], [1], [0, 0, 1, 1], [], []>} : vector<16x16xbf16>, vector<16x32xbf16>, vector<16x32xf32> -> vector<16x32xf32>
    %c0_6 = arith.constant 0 : index
    %c0_7 = arith.constant 0 : index
    %6 = vector.load %arg4[%c0_6, %c0_7] : memref<1x32xf32, #tpu.memory_space<vmem>>, vector<1x32xf32>
    %7 = vector.broadcast %6 : vector<1x32xf32> to vector<16x32xf32>
    %8 = arith.addf %5, %7 : vector<16x32xf32>
    %cst_8 = arith.constant 0.000000e+00 : f32
    %9 = vector.broadcast %cst_8 : f32 to vector<16x32xf32>
    %10 = arith.maximumf %8, %9 : vector<16x32xf32>
    %11 = arith.truncf %10 : vector<16x32xf32> to vector<16x32xbf16>
    %c0_9 = arith.constant 0 : index
    %c0_10 = arith.constant 0 : index
    %12 = vector.load %arg5[%c0_9, %c0_10] : memref<32x32xbf16, #tpu.memory_space<vmem>>, vector<32x32xbf16>
    %cst_11 = arith.constant dense<0.000000e+00> : vector<16x32xf32>
    %13 = tpu.matmul %11, %12, %cst_11 {dimension_numbers = #tpu.dot_dimension_numbers<[1], [0], [0], [1], [0, 0, 1, 1], [], []>} : vector<16x32xbf16>, vector<32x32xbf16>, vector<16x32xf32> -> vector<16x32xf32>
    %14 = arith.truncf %13 : vector<16x32xf32> to vector<16x32xbf16>
    %cst_12 = arith.constant dense<0.000000e+00> : vector<16x32xf32>
    %15 = tpu.matmul %0, %14, %cst_12 {dimension_numbers = #tpu.dot_dimension_numbers<[1], [0], [0], [1], [0, 0, 1, 1], [], []>} : vector<16x16xbf16>, vector<16x32xbf16>, vector<16x32xf32> -> vector<16x32xf32>
    %c0_13 = arith.constant 0 : index
    %c0_14 = arith.constant 0 : index
    %16 = vector.load %arg6[%c0_13, %c0_14] : memref<1x32xf32, #tpu.memory_space<vmem>>, vector<1x32xf32>
    %17 = vector.broadcast %16 : vector<1x32xf32> to vector<16x32xf32>
    %18 = arith.addf %15, %17 : vector<16x32xf32>
    %cst_15 = arith.constant 0.000000e+00 : f32
    %19 = vector.broadcast %cst_15 : f32 to vector<16x32xf32>
    %20 = arith.maximumf %18, %19 : vector<16x32xf32>
    %21 = arith.truncf %20 : vector<16x32xf32> to vector<16x32xbf16>
    %c0_16 = arith.constant 0 : index
    %c0_17 = arith.constant 0 : index
    %22 = vector.load %arg7[%c0_16, %c0_17] : memref<32x32xbf16, #tpu.memory_space<vmem>>, vector<32x32xbf16>
    %cst_18 = arith.constant dense<0.000000e+00> : vector<16x32xf32>
    %23 = tpu.matmul %21, %22, %cst_18 {dimension_numbers = #tpu.dot_dimension_numbers<[1], [0], [0], [1], [0, 0, 1, 1], [], []>} : vector<16x32xbf16>, vector<32x32xbf16>, vector<16x32xf32> -> vector<16x32xf32>
    %24 = arith.truncf %23 : vector<16x32xf32> to vector<16x32xbf16>
    %cst_19 = arith.constant dense<0.000000e+00> : vector<16x32xf32>
    %25 = tpu.matmul %0, %24, %cst_19 {dimension_numbers = #tpu.dot_dimension_numbers<[1], [0], [0], [1], [0, 0, 1, 1], [], []>} : vector<16x16xbf16>, vector<16x32xbf16>, vector<16x32xf32> -> vector<16x32xf32>
    %c0_20 = arith.constant 0 : index
    %c0_21 = arith.constant 0 : index
    %26 = vector.load %arg8[%c0_20, %c0_21] : memref<1x32xf32, #tpu.memory_space<vmem>>, vector<1x32xf32>
    %27 = vector.broadcast %26 : vector<1x32xf32> to vector<16x32xf32>
    %28 = arith.addf %25, %27 : vector<16x32xf32>
    %cst_22 = arith.constant 0.000000e+00 : f32
    %29 = vector.broadcast %cst_22 : f32 to vector<16x32xf32>
    %30 = arith.maximumf %28, %29 : vector<16x32xf32>
    %31 = tpu.iota {dimensions = array<i32: 1>} : vector<1x16xi32>
    %c0_23 = arith.constant 0 : index
    %32 = memref.load %arg0[%c0_23] : memref<2xi32, #tpu.memory_space<smem>>
    %33 = vector.broadcast %32 : i32 to vector<1x16xi32>
    %34 = arith.cmpi eq, %31, %33 : vector<1x16xi32>
    %35 = arith.extui %34 : vector<1x16xi1> to vector<1x16xi32>
    %36 = arith.sitofp %35 : vector<1x16xi32> to vector<1x16xf32>
    %c1 = arith.constant 1 : index
    %37 = memref.load %arg0[%c1] : memref<2xi32, #tpu.memory_space<smem>>
    %38 = vector.broadcast %37 : i32 to vector<1x16xi32>
    %39 = arith.cmpi eq, %31, %38 : vector<1x16xi32>
    %40 = arith.extui %39 : vector<1x16xi1> to vector<1x16xi32>
    %41 = arith.sitofp %40 : vector<1x16xi32> to vector<1x16xf32>
    %42 = tpu.concatenate %36, %41 in 0 : vector<1x16xf32>, vector<1x16xf32> -> vector<2x16xf32>
    %cst_24 = arith.constant dense<0.000000e+00> : vector<2x32xf32>
    %43 = tpu.matmul %42, %30, %cst_24 {dimension_numbers = #tpu.dot_dimension_numbers<[1], [0], [0], [1], [0, 0, 1, 1], [], []>} : vector<2x16xf32>, vector<16x32xf32>, vector<2x32xf32> -> vector<2x32xf32>
    %c0_25 = arith.constant 0 : index
    %c0_26 = arith.constant 0 : index
    %44 = vector.load %arg9[%c0_25, %c0_26] : memref<32x192xbf16, #tpu.memory_space<vmem>>, vector<32x192xbf16>
    %c0_27 = arith.constant 0 : index
    %c0_28 = arith.constant 0 : index
    %45 = vector.load %arg10[%c0_27, %c0_28] : memref<1x192xf32, #tpu.memory_space<vmem>>, vector<1x192xf32>
    %c0_29 = arith.constant 0 : index
    %c0_30 = arith.constant 0 : index
    %46 = vector.load %arg11[%c0_29, %c0_30] : memref<32x96xbf16, #tpu.memory_space<vmem>>, vector<32x96xbf16>
    %c0_31 = arith.constant 0 : index
    %c0_32 = arith.constant 0 : index
    %47 = vector.load %arg12[%c0_31, %c0_32] : memref<1x96xf32, #tpu.memory_space<vmem>>, vector<1x96xf32>
    %c0_33 = arith.constant 0 : index
    %c0_34 = arith.constant 0 : index
    %48 = vector.load %arg13[%c0_33, %c0_34] : memref<32x96xbf16, #tpu.memory_space<vmem>>, vector<32x96xbf16>
    %c0_35 = arith.constant 0 : index
    %c0_36 = arith.constant 0 : index
    %49 = vector.load %arg14[%c0_35, %c0_36] : memref<1x96xf32, #tpu.memory_space<vmem>>, vector<1x96xf32>
    %c0_37 = arith.constant 0 : index
    %c0_38 = arith.constant 0 : index
    %50 = vector.load %arg15[%c0_37, %c0_38] : memref<32x64xbf16, #tpu.memory_space<vmem>>, vector<32x64xbf16>
    %c0_39 = arith.constant 0 : index
    %c0_40 = arith.constant 0 : index
    %51 = vector.load %arg16[%c0_39, %c0_40] : memref<32x64xbf16, #tpu.memory_space<vmem>>, vector<32x64xbf16>
    %c0_41 = arith.constant 0 : index
    %c0_42 = arith.constant 0 : index
    %52 = vector.load %arg17[%c0_41, %c0_42] : memref<1x64xf32, #tpu.memory_space<vmem>>, vector<1x64xf32>
    %c0_43 = arith.constant 0 : index
    %c0_44 = arith.constant 0 : index
    %53 = vector.load %arg18[%c0_43, %c0_44] : memref<32x2xbf16, #tpu.memory_space<vmem>>, vector<32x2xbf16>
    %c0_45 = arith.constant 0 : index
    %c0_46 = arith.constant 0 : index
    %54 = vector.load %arg19[%c0_45, %c0_46] : memref<1x2xf32, #tpu.memory_space<vmem>>, vector<1x2xf32>
    %55 = arith.truncf %43 : vector<2x32xf32> to vector<2x32xbf16>
    %cst_47 = arith.constant dense<0.000000e+00> : vector<2x192xf32>
    %56 = tpu.matmul %55, %44, %cst_47 {dimension_numbers = #tpu.dot_dimension_numbers<[1], [0], [0], [1], [0, 0, 1, 1], [], []>} : vector<2x32xbf16>, vector<32x192xbf16>, vector<2x192xf32> -> vector<2x192xf32>
    %57 = vector.broadcast %45 : vector<1x192xf32> to vector<2x192xf32>
    %58 = arith.addf %56, %57 : vector<2x192xf32>
    %59 = vector.extract_strided_slice %58 {offsets = [0, 0], sizes = [2, 96], strides = [1, 1]} : vector<2x192xf32> to vector<2x96xf32>
    %60 = arith.truncf %43 : vector<2x32xf32> to vector<2x32xbf16>
    %cst_48 = arith.constant dense<0.000000e+00> : vector<2x96xf32>
    %61 = tpu.matmul %60, %46, %cst_48 {dimension_numbers = #tpu.dot_dimension_numbers<[1], [0], [0], [1], [0, 0, 1, 1], [], []>} : vector<2x32xbf16>, vector<32x96xbf16>, vector<2x96xf32> -> vector<2x96xf32>
    %62 = vector.broadcast %47 : vector<1x96xf32> to vector<2x96xf32>
    %63 = arith.addf %61, %62 : vector<2x96xf32>
    %64 = vector.extract_strided_slice %59 {offsets = [0, 0], sizes = [2, 32], strides = [1, 1]} : vector<2x96xf32> to vector<2x32xf32>
    %65 = vector.extract_strided_slice %63 {offsets = [0, 0], sizes = [2, 32], strides = [1, 1]} : vector<2x96xf32> to vector<2x32xf32>
    %66 = arith.addf %64, %65 : vector<2x32xf32>
    %67 = arith.negf %66 : vector<2x32xf32>
    %68 = math.exp %67 : vector<2x32xf32>
    %cst_49 = arith.constant 1.000000e+00 : f32
    %69 = vector.broadcast %cst_49 : f32 to vector<2x32xf32>
    %70 = arith.addf %69, %68 : vector<2x32xf32>
    %71 = arith.divf %69, %70 : vector<2x32xf32>
    %72 = vector.extract_strided_slice %59 {offsets = [0, 32], sizes = [2, 32], strides = [1, 1]} : vector<2x96xf32> to vector<2x32xf32>
    %73 = vector.extract_strided_slice %63 {offsets = [0, 32], sizes = [2, 32], strides = [1, 1]} : vector<2x96xf32> to vector<2x32xf32>
    %74 = arith.addf %72, %73 : vector<2x32xf32>
    %75 = arith.negf %74 : vector<2x32xf32>
    %76 = math.exp %75 : vector<2x32xf32>
    %cst_50 = arith.constant 1.000000e+00 : f32
    %77 = vector.broadcast %cst_50 : f32 to vector<2x32xf32>
    %78 = arith.addf %77, %76 : vector<2x32xf32>
    %79 = arith.divf %77, %78 : vector<2x32xf32>
    %80 = vector.extract_strided_slice %59 {offsets = [0, 64], sizes = [2, 32], strides = [1, 1]} : vector<2x96xf32> to vector<2x32xf32>
    %81 = vector.extract_strided_slice %63 {offsets = [0, 64], sizes = [2, 32], strides = [1, 1]} : vector<2x96xf32> to vector<2x32xf32>
    %82 = arith.mulf %71, %81 : vector<2x32xf32>
    %83 = arith.addf %80, %82 : vector<2x32xf32>
    %84 = math.tanh %83 : vector<2x32xf32>
    %cst_51 = arith.constant 1.000000e+00 : f32
    %85 = vector.broadcast %cst_51 : f32 to vector<2x32xf32>
    %86 = arith.subf %85, %79 : vector<2x32xf32>
    %87 = arith.mulf %86, %84 : vector<2x32xf32>
    %88 = arith.mulf %79, %43 : vector<2x32xf32>
    %89 = arith.addf %87, %88 : vector<2x32xf32>
    %90 = vector.extract_strided_slice %58 {offsets = [0, 96], sizes = [2, 96], strides = [1, 1]} : vector<2x192xf32> to vector<2x96xf32>
    %91 = arith.truncf %43 : vector<2x32xf32> to vector<2x32xbf16>
    %cst_52 = arith.constant dense<0.000000e+00> : vector<2x96xf32>
    %92 = tpu.matmul %91, %48, %cst_52 {dimension_numbers = #tpu.dot_dimension_numbers<[1], [0], [0], [1], [0, 0, 1, 1], [], []>} : vector<2x32xbf16>, vector<32x96xbf16>, vector<2x96xf32> -> vector<2x96xf32>
    %93 = vector.broadcast %49 : vector<1x96xf32> to vector<2x96xf32>
    %94 = arith.addf %92, %93 : vector<2x96xf32>
    %95 = vector.extract_strided_slice %90 {offsets = [0, 0], sizes = [2, 32], strides = [1, 1]} : vector<2x96xf32> to vector<2x32xf32>
    %96 = vector.extract_strided_slice %94 {offsets = [0, 0], sizes = [2, 32], strides = [1, 1]} : vector<2x96xf32> to vector<2x32xf32>
    %97 = arith.addf %95, %96 : vector<2x32xf32>
    %98 = arith.negf %97 : vector<2x32xf32>
    %99 = math.exp %98 : vector<2x32xf32>
    %cst_53 = arith.constant 1.000000e+00 : f32
    %100 = vector.broadcast %cst_53 : f32 to vector<2x32xf32>
    %101 = arith.addf %100, %99 : vector<2x32xf32>
    %102 = arith.divf %100, %101 : vector<2x32xf32>
    %103 = vector.extract_strided_slice %90 {offsets = [0, 32], sizes = [2, 32], strides = [1, 1]} : vector<2x96xf32> to vector<2x32xf32>
    %104 = vector.extract_strided_slice %94 {offsets = [0, 32], sizes = [2, 32], strides = [1, 1]} : vector<2x96xf32> to vector<2x32xf32>
    %105 = arith.addf %103, %104 : vector<2x32xf32>
    %106 = arith.negf %105 : vector<2x32xf32>
    %107 = math.exp %106 : vector<2x32xf32>
    %cst_54 = arith.constant 1.000000e+00 : f32
    %108 = vector.broadcast %cst_54 : f32 to vector<2x32xf32>
    %109 = arith.addf %108, %107 : vector<2x32xf32>
    %110 = arith.divf %108, %109 : vector<2x32xf32>
    %111 = vector.extract_strided_slice %90 {offsets = [0, 64], sizes = [2, 32], strides = [1, 1]} : vector<2x96xf32> to vector<2x32xf32>
    %112 = vector.extract_strided_slice %94 {offsets = [0, 64], sizes = [2, 32], strides = [1, 1]} : vector<2x96xf32> to vector<2x32xf32>
    %113 = arith.mulf %102, %112 : vector<2x32xf32>
    %114 = arith.addf %111, %113 : vector<2x32xf32>
    %115 = math.tanh %114 : vector<2x32xf32>
    %cst_55 = arith.constant 1.000000e+00 : f32
    %116 = vector.broadcast %cst_55 : f32 to vector<2x32xf32>
    %117 = arith.subf %116, %110 : vector<2x32xf32>
    %118 = arith.mulf %117, %115 : vector<2x32xf32>
    %119 = arith.mulf %110, %43 : vector<2x32xf32>
    %120 = arith.addf %118, %119 : vector<2x32xf32>
    %121 = arith.truncf %89 : vector<2x32xf32> to vector<2x32xbf16>
    %cst_56 = arith.constant dense<0.000000e+00> : vector<2x64xf32>
    %122 = tpu.matmul %121, %50, %cst_56 {dimension_numbers = #tpu.dot_dimension_numbers<[1], [0], [0], [1], [0, 0, 1, 1], [], []>} : vector<2x32xbf16>, vector<32x64xbf16>, vector<2x64xf32> -> vector<2x64xf32>
    %123 = arith.truncf %120 : vector<2x32xf32> to vector<2x32xbf16>
    %cst_57 = arith.constant dense<0.000000e+00> : vector<2x64xf32>
    %124 = tpu.matmul %123, %51, %cst_57 {dimension_numbers = #tpu.dot_dimension_numbers<[1], [0], [0], [1], [0, 0, 1, 1], [], []>} : vector<2x32xbf16>, vector<32x64xbf16>, vector<2x64xf32> -> vector<2x64xf32>
    %125 = arith.addf %122, %124 : vector<2x64xf32>
    %126 = vector.broadcast %52 : vector<1x64xf32> to vector<2x64xf32>
    %127 = arith.addf %125, %126 : vector<2x64xf32>
    %128 = vector.extract_strided_slice %127 {offsets = [0, 0], sizes = [2, 32], strides = [1, 1]} : vector<2x64xf32> to vector<2x32xf32>
    %cst_58 = arith.constant 0.000000e+00 : f32
    %129 = vector.broadcast %cst_58 : f32 to vector<2x32xf32>
    %130 = arith.maximumf %128, %129 : vector<2x32xf32>
    %131 = arith.truncf %130 : vector<2x32xf32> to vector<2x32xbf16>
    %cst_59 = arith.constant dense<0.000000e+00> : vector<2x2xf32>
    %132 = tpu.matmul %131, %53, %cst_59 {dimension_numbers = #tpu.dot_dimension_numbers<[1], [0], [0], [1], [0, 0, 1, 1], [], []>} : vector<2x32xbf16>, vector<32x2xbf16>, vector<2x2xf32> -> vector<2x2xf32>
    %133 = vector.broadcast %54 : vector<1x2xf32> to vector<2x2xf32>
    %134 = arith.addf %132, %133 : vector<2x2xf32>
    %135 = vector.extract_strided_slice %127 {offsets = [0, 32], sizes = [2, 32], strides = [1, 1]} : vector<2x64xf32> to vector<2x32xf32>
    %136 = arith.truncf %135 : vector<2x32xf32> to vector<2x32xbf16>
    %cst_60 = arith.constant dense<0.000000e+00> : vector<2x192xf32>
    %137 = tpu.matmul %136, %44, %cst_60 {dimension_numbers = #tpu.dot_dimension_numbers<[1], [0], [0], [1], [0, 0, 1, 1], [], []>} : vector<2x32xbf16>, vector<32x192xbf16>, vector<2x192xf32> -> vector<2x192xf32>
    %138 = vector.broadcast %45 : vector<1x192xf32> to vector<2x192xf32>
    %139 = arith.addf %137, %138 : vector<2x192xf32>
    %140 = vector.extract_strided_slice %139 {offsets = [0, 0], sizes = [2, 96], strides = [1, 1]} : vector<2x192xf32> to vector<2x96xf32>
    %141 = arith.truncf %89 : vector<2x32xf32> to vector<2x32xbf16>
    %cst_61 = arith.constant dense<0.000000e+00> : vector<2x96xf32>
    %142 = tpu.matmul %141, %46, %cst_61 {dimension_numbers = #tpu.dot_dimension_numbers<[1], [0], [0], [1], [0, 0, 1, 1], [], []>} : vector<2x32xbf16>, vector<32x96xbf16>, vector<2x96xf32> -> vector<2x96xf32>
    %143 = vector.broadcast %47 : vector<1x96xf32> to vector<2x96xf32>
    %144 = arith.addf %142, %143 : vector<2x96xf32>
    %145 = vector.extract_strided_slice %140 {offsets = [0, 0], sizes = [2, 32], strides = [1, 1]} : vector<2x96xf32> to vector<2x32xf32>
    %146 = vector.extract_strided_slice %144 {offsets = [0, 0], sizes = [2, 32], strides = [1, 1]} : vector<2x96xf32> to vector<2x32xf32>
    %147 = arith.addf %145, %146 : vector<2x32xf32>
    %148 = arith.negf %147 : vector<2x32xf32>
    %149 = math.exp %148 : vector<2x32xf32>
    %cst_62 = arith.constant 1.000000e+00 : f32
    %150 = vector.broadcast %cst_62 : f32 to vector<2x32xf32>
    %151 = arith.addf %150, %149 : vector<2x32xf32>
    %152 = arith.divf %150, %151 : vector<2x32xf32>
    %153 = vector.extract_strided_slice %140 {offsets = [0, 32], sizes = [2, 32], strides = [1, 1]} : vector<2x96xf32> to vector<2x32xf32>
    %154 = vector.extract_strided_slice %144 {offsets = [0, 32], sizes = [2, 32], strides = [1, 1]} : vector<2x96xf32> to vector<2x32xf32>
    %155 = arith.addf %153, %154 : vector<2x32xf32>
    %156 = arith.negf %155 : vector<2x32xf32>
    %157 = math.exp %156 : vector<2x32xf32>
    %cst_63 = arith.constant 1.000000e+00 : f32
    %158 = vector.broadcast %cst_63 : f32 to vector<2x32xf32>
    %159 = arith.addf %158, %157 : vector<2x32xf32>
    %160 = arith.divf %158, %159 : vector<2x32xf32>
    %161 = vector.extract_strided_slice %140 {offsets = [0, 64], sizes = [2, 32], strides = [1, 1]} : vector<2x96xf32> to vector<2x32xf32>
    %162 = vector.extract_strided_slice %144 {offsets = [0, 64], sizes = [2, 32], strides = [1, 1]} : vector<2x96xf32> to vector<2x32xf32>
    %163 = arith.mulf %152, %162 : vector<2x32xf32>
    %164 = arith.addf %161, %163 : vector<2x32xf32>
    %165 = math.tanh %164 : vector<2x32xf32>
    %cst_64 = arith.constant 1.000000e+00 : f32
    %166 = vector.broadcast %cst_64 : f32 to vector<2x32xf32>
    %167 = arith.subf %166, %160 : vector<2x32xf32>
    %168 = arith.mulf %167, %165 : vector<2x32xf32>
    %169 = arith.mulf %160, %89 : vector<2x32xf32>
    %170 = arith.addf %168, %169 : vector<2x32xf32>
    %171 = vector.extract_strided_slice %139 {offsets = [0, 96], sizes = [2, 96], strides = [1, 1]} : vector<2x192xf32> to vector<2x96xf32>
    %172 = arith.truncf %120 : vector<2x32xf32> to vector<2x32xbf16>
    %cst_65 = arith.constant dense<0.000000e+00> : vector<2x96xf32>
    %173 = tpu.matmul %172, %48, %cst_65 {dimension_numbers = #tpu.dot_dimension_numbers<[1], [0], [0], [1], [0, 0, 1, 1], [], []>} : vector<2x32xbf16>, vector<32x96xbf16>, vector<2x96xf32> -> vector<2x96xf32>
    %174 = vector.broadcast %49 : vector<1x96xf32> to vector<2x96xf32>
    %175 = arith.addf %173, %174 : vector<2x96xf32>
    %176 = vector.extract_strided_slice %171 {offsets = [0, 0], sizes = [2, 32], strides = [1, 1]} : vector<2x96xf32> to vector<2x32xf32>
    %177 = vector.extract_strided_slice %175 {offsets = [0, 0], sizes = [2, 32], strides = [1, 1]} : vector<2x96xf32> to vector<2x32xf32>
    %178 = arith.addf %176, %177 : vector<2x32xf32>
    %179 = arith.negf %178 : vector<2x32xf32>
    %180 = math.exp %179 : vector<2x32xf32>
    %cst_66 = arith.constant 1.000000e+00 : f32
    %181 = vector.broadcast %cst_66 : f32 to vector<2x32xf32>
    %182 = arith.addf %181, %180 : vector<2x32xf32>
    %183 = arith.divf %181, %182 : vector<2x32xf32>
    %184 = vector.extract_strided_slice %171 {offsets = [0, 32], sizes = [2, 32], strides = [1, 1]} : vector<2x96xf32> to vector<2x32xf32>
    %185 = vector.extract_strided_slice %175 {offsets = [0, 32], sizes = [2, 32], strides = [1, 1]} : vector<2x96xf32> to vector<2x32xf32>
    %186 = arith.addf %184, %185 : vector<2x32xf32>
    %187 = arith.negf %186 : vector<2x32xf32>
    %188 = math.exp %187 : vector<2x32xf32>
    %cst_67 = arith.constant 1.000000e+00 : f32
    %189 = vector.broadcast %cst_67 : f32 to vector<2x32xf32>
    %190 = arith.addf %189, %188 : vector<2x32xf32>
    %191 = arith.divf %189, %190 : vector<2x32xf32>
    %192 = vector.extract_strided_slice %171 {offsets = [0, 64], sizes = [2, 32], strides = [1, 1]} : vector<2x96xf32> to vector<2x32xf32>
    %193 = vector.extract_strided_slice %175 {offsets = [0, 64], sizes = [2, 32], strides = [1, 1]} : vector<2x96xf32> to vector<2x32xf32>
    %194 = arith.mulf %183, %193 : vector<2x32xf32>
    %195 = arith.addf %192, %194 : vector<2x32xf32>
    %196 = math.tanh %195 : vector<2x32xf32>
    %cst_68 = arith.constant 1.000000e+00 : f32
    %197 = vector.broadcast %cst_68 : f32 to vector<2x32xf32>
    %198 = arith.subf %197, %191 : vector<2x32xf32>
    %199 = arith.mulf %198, %196 : vector<2x32xf32>
    %200 = arith.mulf %191, %120 : vector<2x32xf32>
    %201 = arith.addf %199, %200 : vector<2x32xf32>
    %202 = arith.truncf %170 : vector<2x32xf32> to vector<2x32xbf16>
    %cst_69 = arith.constant dense<0.000000e+00> : vector<2x64xf32>
    %203 = tpu.matmul %202, %50, %cst_69 {dimension_numbers = #tpu.dot_dimension_numbers<[1], [0], [0], [1], [0, 0, 1, 1], [], []>} : vector<2x32xbf16>, vector<32x64xbf16>, vector<2x64xf32> -> vector<2x64xf32>
    %204 = arith.truncf %201 : vector<2x32xf32> to vector<2x32xbf16>
    %cst_70 = arith.constant dense<0.000000e+00> : vector<2x64xf32>
    %205 = tpu.matmul %204, %51, %cst_70 {dimension_numbers = #tpu.dot_dimension_numbers<[1], [0], [0], [1], [0, 0, 1, 1], [], []>} : vector<2x32xbf16>, vector<32x64xbf16>, vector<2x64xf32> -> vector<2x64xf32>
    %206 = arith.addf %203, %205 : vector<2x64xf32>
    %207 = vector.broadcast %52 : vector<1x64xf32> to vector<2x64xf32>
    %208 = arith.addf %206, %207 : vector<2x64xf32>
    %209 = vector.extract_strided_slice %208 {offsets = [0, 0], sizes = [2, 32], strides = [1, 1]} : vector<2x64xf32> to vector<2x32xf32>
    %cst_71 = arith.constant 0.000000e+00 : f32
    %210 = vector.broadcast %cst_71 : f32 to vector<2x32xf32>
    %211 = arith.maximumf %209, %210 : vector<2x32xf32>
    %212 = arith.truncf %211 : vector<2x32xf32> to vector<2x32xbf16>
    %cst_72 = arith.constant dense<0.000000e+00> : vector<2x2xf32>
    %213 = tpu.matmul %212, %53, %cst_72 {dimension_numbers = #tpu.dot_dimension_numbers<[1], [0], [0], [1], [0, 0, 1, 1], [], []>} : vector<2x32xbf16>, vector<32x2xbf16>, vector<2x2xf32> -> vector<2x2xf32>
    %214 = vector.broadcast %54 : vector<1x2xf32> to vector<2x2xf32>
    %215 = arith.addf %213, %214 : vector<2x2xf32>
    %216 = vector.extract_strided_slice %208 {offsets = [0, 32], sizes = [2, 32], strides = [1, 1]} : vector<2x64xf32> to vector<2x32xf32>
    %217 = arith.truncf %216 : vector<2x32xf32> to vector<2x32xbf16>
    %cst_73 = arith.constant dense<0.000000e+00> : vector<2x192xf32>
    %218 = tpu.matmul %217, %44, %cst_73 {dimension_numbers = #tpu.dot_dimension_numbers<[1], [0], [0], [1], [0, 0, 1, 1], [], []>} : vector<2x32xbf16>, vector<32x192xbf16>, vector<2x192xf32> -> vector<2x192xf32>
    %219 = vector.broadcast %45 : vector<1x192xf32> to vector<2x192xf32>
    %220 = arith.addf %218, %219 : vector<2x192xf32>
    %221 = vector.extract_strided_slice %220 {offsets = [0, 0], sizes = [2, 96], strides = [1, 1]} : vector<2x192xf32> to vector<2x96xf32>
    %222 = arith.truncf %170 : vector<2x32xf32> to vector<2x32xbf16>
    %cst_74 = arith.constant dense<0.000000e+00> : vector<2x96xf32>
    %223 = tpu.matmul %222, %46, %cst_74 {dimension_numbers = #tpu.dot_dimension_numbers<[1], [0], [0], [1], [0, 0, 1, 1], [], []>} : vector<2x32xbf16>, vector<32x96xbf16>, vector<2x96xf32> -> vector<2x96xf32>
    %224 = vector.broadcast %47 : vector<1x96xf32> to vector<2x96xf32>
    %225 = arith.addf %223, %224 : vector<2x96xf32>
    %226 = vector.extract_strided_slice %221 {offsets = [0, 0], sizes = [2, 32], strides = [1, 1]} : vector<2x96xf32> to vector<2x32xf32>
    %227 = vector.extract_strided_slice %225 {offsets = [0, 0], sizes = [2, 32], strides = [1, 1]} : vector<2x96xf32> to vector<2x32xf32>
    %228 = arith.addf %226, %227 : vector<2x32xf32>
    %229 = arith.negf %228 : vector<2x32xf32>
    %230 = math.exp %229 : vector<2x32xf32>
    %cst_75 = arith.constant 1.000000e+00 : f32
    %231 = vector.broadcast %cst_75 : f32 to vector<2x32xf32>
    %232 = arith.addf %231, %230 : vector<2x32xf32>
    %233 = arith.divf %231, %232 : vector<2x32xf32>
    %234 = vector.extract_strided_slice %221 {offsets = [0, 32], sizes = [2, 32], strides = [1, 1]} : vector<2x96xf32> to vector<2x32xf32>
    %235 = vector.extract_strided_slice %225 {offsets = [0, 32], sizes = [2, 32], strides = [1, 1]} : vector<2x96xf32> to vector<2x32xf32>
    %236 = arith.addf %234, %235 : vector<2x32xf32>
    %237 = arith.negf %236 : vector<2x32xf32>
    %238 = math.exp %237 : vector<2x32xf32>
    %cst_76 = arith.constant 1.000000e+00 : f32
    %239 = vector.broadcast %cst_76 : f32 to vector<2x32xf32>
    %240 = arith.addf %239, %238 : vector<2x32xf32>
    %241 = arith.divf %239, %240 : vector<2x32xf32>
    %242 = vector.extract_strided_slice %221 {offsets = [0, 64], sizes = [2, 32], strides = [1, 1]} : vector<2x96xf32> to vector<2x32xf32>
    %243 = vector.extract_strided_slice %225 {offsets = [0, 64], sizes = [2, 32], strides = [1, 1]} : vector<2x96xf32> to vector<2x32xf32>
    %244 = arith.mulf %233, %243 : vector<2x32xf32>
    %245 = arith.addf %242, %244 : vector<2x32xf32>
    %246 = math.tanh %245 : vector<2x32xf32>
    %cst_77 = arith.constant 1.000000e+00 : f32
    %247 = vector.broadcast %cst_77 : f32 to vector<2x32xf32>
    %248 = arith.subf %247, %241 : vector<2x32xf32>
    %249 = arith.mulf %248, %246 : vector<2x32xf32>
    %250 = arith.mulf %241, %170 : vector<2x32xf32>
    %251 = arith.addf %249, %250 : vector<2x32xf32>
    %252 = vector.extract_strided_slice %220 {offsets = [0, 96], sizes = [2, 96], strides = [1, 1]} : vector<2x192xf32> to vector<2x96xf32>
    %253 = arith.truncf %201 : vector<2x32xf32> to vector<2x32xbf16>
    %cst_78 = arith.constant dense<0.000000e+00> : vector<2x96xf32>
    %254 = tpu.matmul %253, %48, %cst_78 {dimension_numbers = #tpu.dot_dimension_numbers<[1], [0], [0], [1], [0, 0, 1, 1], [], []>} : vector<2x32xbf16>, vector<32x96xbf16>, vector<2x96xf32> -> vector<2x96xf32>
    %255 = vector.broadcast %49 : vector<1x96xf32> to vector<2x96xf32>
    %256 = arith.addf %254, %255 : vector<2x96xf32>
    %257 = vector.extract_strided_slice %252 {offsets = [0, 0], sizes = [2, 32], strides = [1, 1]} : vector<2x96xf32> to vector<2x32xf32>
    %258 = vector.extract_strided_slice %256 {offsets = [0, 0], sizes = [2, 32], strides = [1, 1]} : vector<2x96xf32> to vector<2x32xf32>
    %259 = arith.addf %257, %258 : vector<2x32xf32>
    %260 = arith.negf %259 : vector<2x32xf32>
    %261 = math.exp %260 : vector<2x32xf32>
    %cst_79 = arith.constant 1.000000e+00 : f32
    %262 = vector.broadcast %cst_79 : f32 to vector<2x32xf32>
    %263 = arith.addf %262, %261 : vector<2x32xf32>
    %264 = arith.divf %262, %263 : vector<2x32xf32>
    %265 = vector.extract_strided_slice %252 {offsets = [0, 32], sizes = [2, 32], strides = [1, 1]} : vector<2x96xf32> to vector<2x32xf32>
    %266 = vector.extract_strided_slice %256 {offsets = [0, 32], sizes = [2, 32], strides = [1, 1]} : vector<2x96xf32> to vector<2x32xf32>
    %267 = arith.addf %265, %266 : vector<2x32xf32>
    %268 = arith.negf %267 : vector<2x32xf32>
    %269 = math.exp %268 : vector<2x32xf32>
    %cst_80 = arith.constant 1.000000e+00 : f32
    %270 = vector.broadcast %cst_80 : f32 to vector<2x32xf32>
    %271 = arith.addf %270, %269 : vector<2x32xf32>
    %272 = arith.divf %270, %271 : vector<2x32xf32>
    %273 = vector.extract_strided_slice %252 {offsets = [0, 64], sizes = [2, 32], strides = [1, 1]} : vector<2x96xf32> to vector<2x32xf32>
    %274 = vector.extract_strided_slice %256 {offsets = [0, 64], sizes = [2, 32], strides = [1, 1]} : vector<2x96xf32> to vector<2x32xf32>
    %275 = arith.mulf %264, %274 : vector<2x32xf32>
    %276 = arith.addf %273, %275 : vector<2x32xf32>
    %277 = math.tanh %276 : vector<2x32xf32>
    %cst_81 = arith.constant 1.000000e+00 : f32
    %278 = vector.broadcast %cst_81 : f32 to vector<2x32xf32>
    %279 = arith.subf %278, %272 : vector<2x32xf32>
    %280 = arith.mulf %279, %277 : vector<2x32xf32>
    %281 = arith.mulf %272, %201 : vector<2x32xf32>
    %282 = arith.addf %280, %281 : vector<2x32xf32>
    %283 = arith.truncf %251 : vector<2x32xf32> to vector<2x32xbf16>
    %cst_82 = arith.constant dense<0.000000e+00> : vector<2x64xf32>
    %284 = tpu.matmul %283, %50, %cst_82 {dimension_numbers = #tpu.dot_dimension_numbers<[1], [0], [0], [1], [0, 0, 1, 1], [], []>} : vector<2x32xbf16>, vector<32x64xbf16>, vector<2x64xf32> -> vector<2x64xf32>
    %285 = arith.truncf %282 : vector<2x32xf32> to vector<2x32xbf16>
    %cst_83 = arith.constant dense<0.000000e+00> : vector<2x64xf32>
    %286 = tpu.matmul %285, %51, %cst_83 {dimension_numbers = #tpu.dot_dimension_numbers<[1], [0], [0], [1], [0, 0, 1, 1], [], []>} : vector<2x32xbf16>, vector<32x64xbf16>, vector<2x64xf32> -> vector<2x64xf32>
    %287 = arith.addf %284, %286 : vector<2x64xf32>
    %288 = vector.broadcast %52 : vector<1x64xf32> to vector<2x64xf32>
    %289 = arith.addf %287, %288 : vector<2x64xf32>
    %290 = vector.extract_strided_slice %289 {offsets = [0, 0], sizes = [2, 32], strides = [1, 1]} : vector<2x64xf32> to vector<2x32xf32>
    %cst_84 = arith.constant 0.000000e+00 : f32
    %291 = vector.broadcast %cst_84 : f32 to vector<2x32xf32>
    %292 = arith.maximumf %290, %291 : vector<2x32xf32>
    %293 = arith.truncf %292 : vector<2x32xf32> to vector<2x32xbf16>
    %cst_85 = arith.constant dense<0.000000e+00> : vector<2x2xf32>
    %294 = tpu.matmul %293, %53, %cst_85 {dimension_numbers = #tpu.dot_dimension_numbers<[1], [0], [0], [1], [0, 0, 1, 1], [], []>} : vector<2x32xbf16>, vector<32x2xbf16>, vector<2x2xf32> -> vector<2x2xf32>
    %295 = vector.broadcast %54 : vector<1x2xf32> to vector<2x2xf32>
    %296 = arith.addf %294, %295 : vector<2x2xf32>
    %297 = tpu.concatenate %134, %215, %296 in 1 : vector<2x2xf32>, vector<2x2xf32>, vector<2x2xf32> -> vector<2x6xf32>
    %c0_86 = arith.constant 0 : index
    %c0_87 = arith.constant 0 : index
    %298 = vector.load %arg20[%c0_86, %c0_87] : memref<2x6xf32, #tpu.memory_space<vmem>>, vector<2x6xf32>
    tpu.vector_store %arg20[%c0_86, %c0_87], %297 {strides = array<i32>} : memref<2x6xf32, #tpu.memory_space<vmem>>, vector<2x6xf32>,
    return
  }
}

</mosaic_0001>

<bundles_post_ra>
// kernel: tpu_custom_call.1
= control target key start
LH: loop header
LB: loop body
LE: loop exit
PB: predicated region body
PF: predicated region fallthrough
CT: control target
= control target key end

     0   :  { %s2178_s0 = inlined_call_operand.vmem [shape: s32[2], index: 0, kind: input, shape index: {}]   ;;  %s2179_s1 = inlined_call_operand.hbm [shape: bf16[16,16], index: 1, kind: input, shape index: {}]   ;;  %s2180_s2 = inlined_call_operand.hbm [shape: bf16[16,16], index: 2, kind: input, shape index: {}]   ;;  %s2181_s3 = inlined_call_operand.hbm [shape: bf16[16,32], index: 3, kind: input, shape index: {}]   ;;  %s2182_s4 = inlined_call_operand.hbm [shape: f32[1,32], index: 4, kind: input, shape index: {}]   ;;  %s2183_s5 = inlined_call_operand.vmem [shape: bf16[32,32], index: 5, kind: input, shape index: {}]   ;;  %s2184_s6 = inlined_call_operand.vmem [shape: f32[1,32], index: 6, kind: input, shape index: {}]   ;;  %s2185_s7 = inlined_call_operand.hbm [shape: bf16[32,32], index: 7, kind: input, shape index: {}]   ;;  %s2186_s8 = inlined_call_operand.vmem [shape: f32[1,32], index: 8, kind: input, shape index: {}]   ;;  %s2187_s9 = inlined_call_operand.hbm [shape: bf16[32,192], index: 9, kind: input, shape index: {}]   ;;  %s2188_s10 = inlined_call_operand.vmem [shape: f32[1,192], index: 10, kind: input, shape index: {}]   ;;  %s2189_s11 = inlined_call_operand.hbm [shape: bf16[32,96], index: 11, kind: input, shape index: {}]   ;;  %s2190_s12 = inlined_call_operand.vmem [shape: f32[1,96], index: 12, kind: input, shape index: {}]   ;;  %s2191_s13 = inlined_call_operand.hbm [shape: bf16[32,96], index: 13, kind: input, shape index: {}]   ;;  %s2192_s14 = inlined_call_operand.vmem [shape: f32[1,96], index: 14, kind: input, shape index: {}]   ;;  %s2193_s15 = inlined_call_operand.hbm [shape: bf16[32,64], index: 15, kind: input, shape index: {}]   ;;  %s2194_s16 = inlined_call_operand.hbm [shape: bf16[32,64], index: 16, kind: input, shape index: {}]   ;;  %s2195_s17 = inlined_call_operand.vmem [shape: f32[1,64], index: 17, kind: input, shape index: {}]   ;;  %s2196_s18 = inlined_call_operand.vmem [shape: bf16[32,2], index: 18, kind: input, shape index: {}]   ;;  %s2197_s19 = inlined_call_operand.vmem [shape: f32[1,2], index: 19, kind: input, shape index: {}]   ;;  %s2198_s20 = inlined_call_operand.hbm [shape: f32[2,6], index: 20, kind: output, shape index: {}]  }
   0x1   :  { %2201 = sst [smem:[#allocation30_spill]] %s2178_s0 }
   0x2   :  { %2202 = sst [smem:[#allocation31_spill]] %s2179_s1 }
   0x3   :  { %2203 = sst [smem:[#allocation32_spill]] %s2180_s2 }
   0x4   :  { %2204 = sst [smem:[#allocation33_spill]] %s2181_s3 }
   0x5   :  { %2205 = sst [smem:[#allocation34_spill]] %s2182_s4 }
   0x6   :  { %2206 = sst [smem:[#allocation35_spill]] %s2197_s19 }
   0x7   :  { %2207 = sst [smem:[#allocation36_spill]] %s2198_s20 }
   0x8   :  { %25 = vsyncpa [#allocation5], 0 }
   0x9   :  { %26 = vsyncpa [#allocation3], 0 }
   0xa   :  { %27 = vsyncpa [#allocation8], 0 }
   0xb   :  { %28 = vsyncpa [#allocation11], 0 }
   0xc   :  { %29 = vsyncpa [#allocation14], 0 }
   0xd   :  { %30 = vsyncpa [#allocation17], 0 }
   0xe   :  { %31 = vsyncpa [#allocation20], 0 }
   0xf   :  { %32 = vsyncpa [#allocation4], 0  ;;  %s2208_s23 = sld [smem:[#allocation32_spill]]  ;;  %s1770_s2 = smov [#allocation7]  }
  0x10   :  { %s61_s25 = sshll.u32 %s1770_s2, 4  ;;  %s2209_s27 = sld [smem:[#allocation34_spill]]  ;;  %s62_s25 = int_to_ptr.vmem [resolvable:$true] %s61_s25 }
  0x11   :  { %s2199_s4 = smov 64   ;;  %s1772_s29 = smov 4  }
  0x12   :  { %s1773_s30 = smov [#allocation10]   ;;  %s115_s22 = sshll.u32 %s2187_s9, 4  ;;  %s116_s22 = int_to_ptr.hbm [resolvable:$true] %s115_s22 }
  0x13   :  { %s88_s0 = sshll.u32 %s1773_s30, 4  ;;  %s1775_s20 = smov 128   ;;  %s89_s0 = int_to_ptr.vmem [resolvable:$true] %s88_s0 }
  0x14   :  { %s1776_s19 = smov 8   ;;  %s2210_s21 = sld [smem:[#allocation30_spill]] }
  0x15   :  { %s59_s24 = sshll.u32 %s2208_s23, 4  ;;  %s1774_s23 = smov [#allocation13]   ;;  %s60_s24 = int_to_ptr.hbm [resolvable:$true] %s59_s24 }
  0x16   :  { %s86_s28 = sshll.u32 %s2209_s27, 4  ;;  %s117_s2 = sshll.u32 %s1774_s23, 4  ;;  %s87_s28 = int_to_ptr.hbm [resolvable:$true] %s86_s28  ;;  %s118_s2 = int_to_ptr.vmem [resolvable:$true] %s117_s2 }
  0x17   :  { %67 = dma.hbm_to_vmem [thread:$0]  %s60_s24, 128, %s62_s25, [#allocation8], %s2199_s4, %s2199_s4, %s1772_s29  }
  0x18   :  { %91 = dma.hbm_to_vmem [thread:$0]  %s87_s28, 16, %s89_s0, [#allocation11]  }
  0x19   :  { %s145_s27 = sshll.u32 %s2191_s13, 4  ;;  %s1777_s24 = smov [#allocation16]   ;;  %s146_s27 = int_to_ptr.hbm [resolvable:$true] %s145_s27 }
  0x1a   :  { %123 = dma.hbm_to_vmem [thread:$0]  %s116_s22, 512, %s118_s2, [#allocation14], %s1775_s20, %s1775_s20, %s1776_s19  }
  0x1b   :  { %s147_s25 = sshll.u32 %s1777_s24, 4  ;;  %s38_s9 = sshll.u32 %s2210_s21, 4  ;;  %s148_s25 = int_to_ptr.vmem [resolvable:$true] %s147_s25  ;;  %s39_s9 = int_to_ptr.vmem [resolvable:$true] %s38_s9 }
  0x1c   :  { %s2211_s28 = smov 64   ;;  %s2212_s23 = sld [smem:[#allocation31_spill]] }
  0x1d   :  { %153 = dma.hbm_to_vmem [thread:$0]  %s146_s27, 256, %s148_s25, [#allocation17], %s2211_s28, %s2211_s28, %s1772_s29  }
  0x1e   :  { %s1778_s3 = smov [#allocation2]   ;;  %s1779_s19 = smov [#allocation6]  }
  0x1f   :  { %41 = dma.vmem_to_smem %s39_s9, 16, %s1778_s3, [#allocation5]  }
  0x20   :  { %s48_s20 = sshll.u32 %s1779_s19, 4  ;;  %s2213_s26 = sld [smem:[#allocation33_spill]]  ;;  %s49_s20 = int_to_ptr.vmem [resolvable:$true] %s48_s20 }
  0x21   :  { %s100_s25 = sshll.u32 %s2185_s7, 4  ;;  %s1780_s30 = smov [#allocation9]   ;;  %s101_s25 = int_to_ptr.hbm [resolvable:$true] %s100_s25 }
  0x22   :  { %s46_s13 = sshll.u32 %s2212_s23, 4  ;;  %s74_s21 = sshll.u32 %s1780_s30, 4  ;;  %s47_s13 = int_to_ptr.hbm [resolvable:$true] %s46_s13  ;;  %s75_s21 = int_to_ptr.vmem [resolvable:$true] %s74_s21 }
  0x23   :  { %54 = dma.hbm_to_vmem [thread:$0]  %s47_s13, 128, %s49_s20, [#allocation3], %s2211_s28, %s2211_s28, %s1772_s29  }
  0x24   :  { %s1781_s9 = smov [#allocation12]   ;;  %s130_s3 = sshll.u32 %s2189_s11, 4  ;;  %s131_s3 = int_to_ptr.hbm [resolvable:$true] %s130_s3 }
  0x25   :  { %s102_s0 = sshll.u32 %s1781_s9, 4  ;;  %s160_s19 = sshll.u32 %s2193_s15, 4  ;;  %s103_s0 = int_to_ptr.vmem [resolvable:$true] %s102_s0  ;;  %s161_s19 = int_to_ptr.hbm [resolvable:$true] %s160_s19 }
  0x26   :  { %s72_s4 = sshll.u32 %s2213_s26, 4  ;;  %s1782_s20 = smov [#allocation15]   ;;  %s73_s4 = int_to_ptr.hbm [resolvable:$true] %s72_s4 }
  0x27   :  { %80 = dma.hbm_to_vmem [thread:$0]  %s73_s4, 128, %s75_s21, [#allocation8], %s2211_s28, %s2211_s28, %s1772_s29  }
  0x28   :  { %108 = dma.hbm_to_vmem [thread:$0]  %s101_s25, 256, %s103_s0, [#allocation11], %s2211_s28, %s2211_s28, %s1772_s29  }
  0x29   :  { %s132_s22 = sshll.u32 %s1782_s20, 4  ;;  %s1783_s2 = smov [#allocation18]   ;;  %s133_s22 = int_to_ptr.vmem [resolvable:$true] %s132_s22 }
  0x2a   :  { %138 = dma.hbm_to_vmem [thread:$0]  %s131_s3, 256, %s133_s22, [#allocation14], %s2211_s28, %s2211_s28, %s1772_s29  }
  0x2b   :  { %s162_s11 = sshll.u32 %s1783_s2, 4  ;;  %s173_s27 = sshll.u32 %s2194_s16, 4  ;;  %s163_s11 = int_to_ptr.vmem [resolvable:$true] %s162_s11  ;;  %s174_s27 = int_to_ptr.hbm [resolvable:$true] %s173_s27 }
  0x2c   :  { %168 = dma.hbm_to_vmem [thread:$0]  %s161_s19, 256, %s163_s11, [#allocation17], %s2211_s28, %s2211_s28, %s1772_s29  }
  0x2d   :  { %s1784_s15 = smov [#allocation19]  }
  0x2e   :  { %s175_s24 = sshll.u32 %s1784_s15, 4  ;;  %s176_s24 = int_to_ptr.vmem [resolvable:$true] %s175_s24 }
  0x2f   :  { %181 = dma.hbm_to_vmem [thread:$0]  %s174_s27, 256, %s176_s24, [#allocation20], %s2211_s28, %s2211_s28, %s1772_s29  }
  0x30   :  { %1754 = dma.done.wait [#allocation5], 16  }
  0x31   :  { %1755 = vsyncadd [#allocation5], 4294967280 }
  0x32   :  { %1756 = dma.done.wait [#allocation3], 128  }
  0x33   :  { %1757 = vsyncadd [#allocation3], 4294967168 }
  0x34   :  { %1758 = dma.done.wait [#allocation8], 256  }
  0x35   :  { %1759 = vsyncadd [#allocation8], 4294967040 }
  0x36   :  { %1760 = dma.done.wait [#allocation11], 272  }
  0x37   :  { %1761 = vsyncadd [#allocation11], 4294967024 }
  0x38   :  { %1762 = dma.done.wait [#allocation14], 768  }
  0x39   :  { %1763 = vsyncadd [#allocation14], 4294966528 }
  0x3a   :  { %1764 = dma.done.wait [#allocation17], 512  }
  0x3b   :  { %1765 = vsyncadd [#allocation17], 4294966784 }
  0x3c   :  { %1766 = dma.done.wait [#allocation20], 256  }
  0x3d   :  { %1767 = vsyncadd [#allocation20], 4294967040 }
  0x3e   :  { %232 = sfence }
  0x3f   :  { %v1384_v0 = vld [vmem:[#allocation9] sm:$0xff]  ;;  %v1383_v1 = vld [vmem:[#allocation7] sm:$0xff]  ;;  %vm251_vm0 = vcmask 130048   ;;  %v1382_v5 = vld [vmem:[#allocation6] sm:$0xff]  ;;  %vm315_vm1 = vcmask 261120   ;;  %s1293_s0 = sld [smem:[#allocation2 + $0x1]]  ;;  %v409_v36 = vlaneseq }
  0x40   :  { %262 = vmatpush.bf16.msra.mxu0 %v1384_v0  ;;  %v1386_v6 = vld [vmem:[%s2183_s5 + $0x8] sm:$0xff]  ;;  %v1385_v7 = vld [vmem:[%s2183_s5] sm:$0xff]  ;;  %v1423_v9 = vld [vmem:[#allocation10] ss:$0 sm:$0xff]  ;;  %v1785_v45 = vmov 0.0   ;;  %vm421_vm4 = vcmask 1040384  }
  0x41   :  { %325 = vmatpush.bf16.msra.mxu2 %v1386_v6  ;;  %v1388_v19 = vld [vmem:[#allocation12 + $0x8] sm:$0xff]  ;;  %v1387_v20 = vld [vmem:[#allocation12] sm:$0xff]  ;;  %v1967_v34 = vld [vmem:[#allocation15 + $0x8] sm:$0xff]  ;;  %v410_v38 = vand.u32 127, %v409_v36  ;;  %s1786_s19 = smov 32   ;;  %s2214_s27 = sld [smem:[#allocation35_spill]] }
  0x42   :  { %v1424_v22 = vld [vmem:[%s2184_s6] ss:$0 sm:$0xff]  ;;  %v1306_v32 = vld [vmem:[#allocation13 + $0x10] sm:$0xf]  ;;  %v1392_v33 = vld [vmem:[#allocation13 + $0x14] sm:$0xf0] }
  0x43   :  { %1266 = vmatmul.msk.bf16.vlgmr.msra.gmra.mxu0 %vm251_vm0, %v1383_v1  ;;  %v1969_v35 = vor.u32 %v1392_v33, %v1306_v32  ;;  %s411_s6 = sld [smem:[#allocation2]]  ;;  %v1425_v41 = vld [vmem:[%s2186_s8] ss:$0 sm:$0xff]  ;;  %v1308_v52 = vld [vmem:[#allocation13 + $0x18] sm:$0xf0]  ;;  %v1985_v59 = vld [vmem:[#allocation15] sm:$0xff] }
  0x44   :  { %380 = vmatpush.bf16.msrb.mxu0 %v1388_v19  ;;  %v1391_v51 = vld [vmem:[#allocation13 + $0x14] sm:$0xf]  ;;  %v1979_v54 = vld [vmem:[#allocation16 + $0x8] sm:$0xff]  ;;  %v1298_v55 = vld [vmem:[#allocation13] sm:$0xf]  ;;  %s1789_s15 = smov [#allocation21]  }
  0x45   :  { %326 = vmatpush.bf16.msra.mxu2 %v1385_v7  ;;  %v417_v40 = vstv %s1293_s0  ;;  %v1977_v53 = vor.u32 %v1391_v51, %v1308_v52  ;;  %v1390_v56 = vld [vmem:[#allocation13 + $0x4] sm:$0xf0]  ;;  %v1389_v57 = vld [vmem:[#allocation13 + $0x4] sm:$0xf]  ;;  %v1300_v60 = vld [vmem:[#allocation13 + $0x8] sm:$0xf0] }
  0x46   :  { %vm418_vm3 = vcmp.eq.s32.totalorder %v410_v38, %v417_v40  ;;  %v1983_v58 = vor.u32 %v1390_v56, %v1298_v55  ;;  %v1987_v61 = vld [vmem:[#allocation16] sm:$0xff]  ;;  %v1989_v62 = vor.u32 %v1389_v57, %v1300_v60  ;;  %s1240_s24 = sshll.u32 %s1789_s15, 4  ;;  %s2215_s30 = sld [smem:[#allocation36_spill]]  ;;  %s1241_s24 = int_to_ptr.vmem [resolvable:$true] %s1240_s24 }
  0x47   :  { %v1294_v47 = vsel %vm418_vm3, 1.0, %v1785_v45  ;;  %v2008_v1 = vld [vmem:[%s2190_s12] ss:$0 sm:$0xff]  ;;  %s1787_s12 = smov 96  }
  0x48   :  { %381 = vmatpush.bf16.msrb.mxu0 %v1387_v20 }
  0x49   :  { %510 = vmatpush.bf16.msrb.mxu2 %v1969_v35  ;;  %v412_v39 = vstv %s411_s6 }
  0x4a   :  { %vm413_vm2 = vcmp.eq.s32.totalorder %v410_v38, %v412_v39 }
  0x4b   :  { %v1292_v46 = vsel %vm413_vm2, 1.0, %v1785_v45 }
  0x4c   :  { %551 = vmatpush.bf16.msra.mxu0 %v1967_v34  ;;  %v422_v50 = vsel %vm421_vm4, %v1292_v46, %v1294_v47  ;;  %s1242_s21 = sshll.u32 %s2215_s30, 4  ;;  %s1243_s21 = int_to_ptr.hbm [resolvable:$true] %s1242_s21 }
  0x4d   :  { %511 = vmatpush.bf16.msrb.mxu2 %v1983_v58 }
  0x50   :  { %552 = vmatpush.bf16.msra.mxu0 %v1985_v59 }
  0xc0   :  { %v264_v2 = vpop.f32.mrf.mxu0 }
  0xc8   :  { %v266_v3 = vpop.f32.mrf.mxu0 }
  0xc9   :  { %v269_v4 = vpack.c.bf16 %v266_v3, %v264_v2  ;;  %v2013_v2 = vld [vmem:[%s2192_s14] ss:$0 sm:$0xff] }
  0xcb   :  { %289 = vmatpush.bf16.msra.mxu1 %v269_v4 }
  0xce   :  { %1271 = vmatmul.msk.bf16.vlgmr.msra.gmra.mxu1 %vm251_vm0, %v1382_v5 }
 0x14b   :  { %v291_v8 = vpop.f32.mrf.mxu1 }
 0x14c   :  { %v292_v10 = vadd.f32 %v1423_v9, %v291_v8 }
 0x14e   :  { %v296_v13 = vmax.f32 %v292_v10, 0.0 }
 0x153   :  { %v293_v11 = vpop.f32.mrf.mxu1 }
 0x154   :  { %v294_v12 = vadd.f32 %v1423_v9, %v293_v11 }
 0x156   :  { %v297_v14 = vmax.f32 %v294_v12, 0.0 }
 0x158   :  { %v298_v15 = vpack.c.bf16 %v297_v14, %v296_v13  ;;  %v450_v13 = vld [vmem:[%s2188_s10] sm:$0x3] }
 0x159   :  { %v2027_v14 = vperm.slane %v450_v13, 0  ;;  %v2032_v56 = vperm.slane %v450_v13, 1 }
 0x15a   :  { %1280 = vmatmul.msk.bf16.vlgmr.msra.gmra.mxu2 %vm315_vm1, %v298_v15 }
 0x1dd   :  { %v328_v16 = vpop.f32.mrf.mxu2 }
 0x1e5   :  { %v330_v17 = vpop.f32.mrf.mxu2 }
 0x1e6   :  { %v333_v18 = vpack.c.bf16 %v330_v17, %v328_v16 }
 0x1e8   :  { %345 = vmatpush.bf16.msra.mxu3 %v333_v18 }
 0x1eb   :  { %1281 = vmatmul.msk.bf16.vlgmr.msra.gmra.mxu3 %vm251_vm0, %v1382_v5 }
 0x26e   :  { %v347_v21 = vpop.f32.mrf.mxu3 }
 0x26f   :  { %v348_v23 = vadd.f32 %v1424_v22, %v347_v21 }
 0x271   :  { %v352_v26 = vmax.f32 %v348_v23, 0.0 }
 0x276   :  { %v349_v24 = vpop.f32.mrf.mxu3 }
 0x277   :  { %v350_v25 = vadd.f32 %v1424_v22, %v349_v24 }
 0x279   :  { %v353_v27 = vmax.f32 %v350_v25, 0.0 }
 0x27b   :  { %v354_v28 = vpack.c.bf16 %v353_v27, %v352_v26 }
 0x27d   :  { %1290 = vmatmul.msk.bf16.vlgmr.msrb.gmra.mxu0 %vm315_vm1, %v354_v28 }
 0x2fa   :  { %v383_v29 = vpop.f32.mrf.mxu0 }
 0x302   :  { %v385_v30 = vpop.f32.mrf.mxu0 }
 0x303   :  { %v388_v31 = vpack.c.bf16 %v385_v30, %v383_v29 }
 0x305   :  { %400 = vmatpush.bf16.msrb.mxu1 %v388_v31 }
 0x308   :  { %1291 = vmatmul.msk.bf16.vlgmr.msrb.gmra.mxu1 %vm251_vm0, %v1382_v5 }
 0x309   :  { %622 = vmatpush.bf16.msra.mxu1 %v1979_v54 }
 0x30d   :  { %623 = vmatpush.bf16.msra.mxu1 %v1987_v61 }
 0x311   :  { %802 = vmatpush.bf16.msrb.mxu1 %v1969_v35 }
 0x315   :  { %803 = vmatpush.bf16.msrb.mxu1 %v1983_v58 }
 0x385   :  { %v402_v37 = vpop.f32.mrf.mxu1 }
 0x386   :  { %v403_v43 = vadd.f32 %v1425_v41, %v402_v37 }
 0x388   :  { %v407_v49 = vmax.f32 %v403_v43, 0.0 }
 0x38d   :  { %v404_v42 = vpop.f32.mrf.mxu1 }
 0x38e   :  { %v405_v44 = vadd.f32 %v1425_v41, %v404_v42 }
 0x390   :  { %v408_v48 = vmax.f32 %v405_v44, 0.0 }
 0x392   :  { %440 = vmatpush.msrb.mxu3 %v408_v48 }
 0x394   :  { %441 = vmatpush.msrb.mxu3 %v407_v49 }
 0x395   :  { %1295 = vmatmul.msk.f32.vlgmr.msrb.gmra.mxu3 %vm251_vm0, %v422_v50 }
 0x396   :  { %523 = vmatpush.bf16.msra.mxu3 %v1977_v53 }
 0x39a   :  { %524 = vmatpush.bf16.msra.mxu3 %v1989_v62 }
 0x418   :  { %v1997_v63 = vpop.f32.mrf.mxu3 }
 0x419   :  { %v475_v0 = vpack.c.bf16 %v1997_v63, %v1997_v63 }
 0x41b   :  { %1312 = vmatmul.msk.bf16.vlgmr.msrb.gmra.mxu2 %vm315_vm1, %v475_v0  ;;  %1322 = vmatmul.msk.bf16.vlgmr.msra.gmra.mxu0 %vm315_vm1, %v475_v0 }
 0x41c   :  { %1313 = vmatmul.msk.bf16.vlgmr.msra.gmra.mxu3 %vm315_vm1, %v475_v0  ;;  %1332 = vmatmul.msk.bf16.vlgmr.msra.gmra.mxu1 %vm315_vm1, %v475_v0 }
 0x498   :  { %v554_v3 = vpop.f32.mrf.mxu0 }
 0x499   :  { %v555_v4 = vadd.f32 %v2008_v1, %v554_v3  ;;  %v625_v5 = vpop.f32.mrf.mxu1 }
 0x49a   :  { %v626_v6 = vadd.f32 %v2013_v2, %v625_v5 }
 0x49b   :  { %579 = vrot.lane.b32.xlu0 %v555_v4, %s2211_s28 }
 0x49c   :  { %673 = vrot.lane.b32.xlu1 %v626_v6, %s1786_s19 }
 0x49e   :  { %v513_v7 = vpop.f32.mrf.mxu2 }
 0x49f   :  { %v2019_v8 = vpop.f32.mrf.mxu3  ;;  %v514_v15 = vadd.f32 %v513_v7, %v2027_v14 }
 0x4a0   :  { %v556_v9 = vpop.f32.mrf.mxu0  ;;  %v527_v57 = vadd.f32 %v2019_v8, %v2032_v56 }
 0x4a1   :  { %v627_v10 = vpop.f32.mrf.mxu1  ;;  %v558_v16 = vadd.f32 %v555_v4, %v514_v15  ;;  %v2038_v4 = vld [vmem:[#allocation19 + $0x8] sm:$0xff] }
 0x4a2   :  { %714 = vmatpush.bf16.msra.mxu2 %v2038_v4  ;;  %960 = vmatpush.bf16.msra.mxu1 %v2038_v4 }
 0x4a3   :  { %630 = vrot.lane.b32.xlu0 %v626_v6, %s1787_s12  ;;  %v1323_v17 = vmul.f32 -1.442695, %v558_v16 }
 0x4a5   :  { %1430 = vpow2.f32 %v1323_v17  ;;  %v2047_v17 = vld [vmem:[#allocation19] sm:$0xff] }
 0x4a6   :  { %v515_v11 = vpop.f32.mrf.mxu2  ;;  %715 = vmatpush.bf16.msra.mxu2 %v2047_v17  ;;  %961 = vmatpush.bf16.msra.mxu1 %v2047_v17 }
 0x4a7   :  { %v528_v12 = vpop.f32.mrf.mxu3 }
 0x4aa   :  { %815 = vmatpush.bf16.msrb.mxu2 %v1977_v53 }
 0x4ab   :  { %596 = vrot.lane.b32.xlu0 %v1997_v63, %s1786_s19  ;;  %v1431_v18 = vpop.eup %1430 }
 0x4ac   :  { %v562_v19 = vadd.f32 1.0, %v1431_v18 }
 0x4ae   :  { %1432 = vrcp.f32 %v562_v19  ;;  %v574_v25 = vand.u32 2147483648, %v562_v19  ;;  %vm568_vm6 = vweird.f32 %v562_v19  ;;  %v572_v26 = vand.u32 2147483647, %v562_v19  ;;  %816 = vmatpush.bf16.msrb.mxu2 %v1989_v62 }
 0x4b0   :  { %v575_v28 = vor.u32 1.1754944e-38, %v574_v25  ;;  %vm573_vm8 = vcmp.eq.f32.partialorder %v572_v26, 8.507059e+37 }
 0x4b4   :  { %v1433_v20 = vpop.eup %1432 }
 0x4b5   :  { %v564_v21 = vmul.f32 %v1433_v20, %v562_v19  ;;  %vm569_vm5 = vweird.f32 %v1433_v20  ;;  %v2052_v19 = vld [vmem:[#allocation18 + $0x8] sm:$0xff] }
 0x4b6   :  { %vm570_vm7 = vmor %vm568_vm6, %vm569_vm5  ;;  %745 = vmatpush.bf16.msrb.mxu3 %v2052_v19 }
 0x4b7   :  { %v565_v22 = vsub.f32 1.0, %v564_v21  ;;  %v2055_v21 = vld [vmem:[#allocation18] sm:$0xff] }
 0x4b9   :  { %v566_v23 = vmul.f32 %v1433_v20, %v565_v22 }
 0x4ba   :  { %746 = vmatpush.bf16.msrb.mxu3 %v2055_v21 }
 0x4bb   :  { %v567_v24 = vadd.f32 %v1433_v20, %v566_v23 }
 0x4bd   :  { %v571_v27 = vsel %vm570_vm7, %v1433_v20, %v567_v24 }
 0x4be   :  { %v576_v30 = vsel %vm573_vm8, %v575_v28, %v571_v27  ;;  %828 = vmatpush.bf16.msra.mxu3 %v1967_v34 }
 0x4bf   :  { %v589_v10 = vsub.f32 1.0, %v576_v30 }
 0x4c2   :  { %829 = vmatpush.bf16.msra.mxu3 %v1985_v59 }
 0x50d   :  { %v580_v29 = vpop.permute.xlu0 %579 }
 0x50e   :  { %v582_v31 = vmul.f32 %v580_v29, %v576_v30  ;;  %v674_v48 = vpop.permute.xlu1 %673 }
 0x510   :  { %584 = vrot.lane.b32.xlu1 %v582_v31, %s2211_s28 }
 0x515   :  { %v631_v32 = vpop.permute.xlu0 %630 }
 0x516   :  { %v633_v33 = vadd.f32 %v631_v32, %v514_v15  ;;  %v653_v5 = vadd.f32 %v631_v32, %v527_v57 }
 0x518   :  { %v1333_v36 = vmul.f32 -1.442695, %v633_v33  ;;  %v1334_v6 = vmul.f32 -1.442695, %v653_v5 }
 0x51a   :  { %1434 = vpow2.f32 %v1333_v36 }
 0x51d   :  { %v597_v7 = vpop.permute.xlu0 %596 }
 0x51e   :  { %v599_v8 = vmul.f32 %v597_v7, %v576_v30 }
 0x520   :  { %v1435_v37 = vpop.eup %1434 }
 0x521   :  { %v637_v38 = vadd.f32 1.0, %v1435_v37 }
 0x523   :  { %1436 = vrcp.f32 %v637_v38  ;;  %v649_v42 = vand.u32 2147483648, %v637_v38  ;;  %v647_v44 = vand.u32 2147483647, %v637_v38  ;;  %vm643_vm10 = vweird.f32 %v637_v38 }
 0x525   :  { %v650_v46 = vor.u32 1.1754944e-38, %v649_v42  ;;  %vm648_vm12 = vcmp.eq.f32.partialorder %v647_v44, 8.507059e+37  ;;  %v2092_v42 = vld [vmem:[%s2195_s17] ss:$0 sm:$0xff] }
 0x529   :  { %v1437_v39 = vpop.eup %1436 }
 0x52a   :  { %v639_v40 = vmul.f32 %v1437_v39, %v637_v38  ;;  %vm644_vm9 = vweird.f32 %v1437_v39 }
 0x52b   :  { %vm645_vm11 = vmor %vm643_vm10, %vm644_vm9 }
 0x52c   :  { %v640_v41 = vsub.f32 1.0, %v639_v40 }
 0x52e   :  { %v641_v43 = vmul.f32 %v1437_v39, %v640_v41  ;;  %v2081_v41 = vld [vmem:[%s2196_s18] sm:$0xff] }
 0x530   :  { %v642_v45 = vadd.f32 %v1437_v39, %v641_v43 }
 0x532   :  { %v646_v47 = vsel %vm645_vm11, %v1437_v39, %v642_v45 }
 0x533   :  { %v651_v49 = vsel %vm648_vm12, %v650_v46, %v646_v47 }
 0x534   :  { %v676_v50 = vmul.f32 %v674_v48, %v651_v49 }
 0x536   :  { %678 = vrot.lane.b32.xlu2 %v676_v50, %s2211_s28 }
 0x582   :  { %v585_v51 = vpop.permute.xlu1 %584 }
 0x583   :  { %v587_v52 = vadd.f32 %v585_v51, %v514_v15 }
 0x585   :  { %1438 = vtanh.f32 %v587_v52 }
 0x58b   :  { %v1439_v55 = vpop.eup %1438 }
 0x58c   :  { %591 = vrot.lane.b32.xlu2 %v1439_v55, %s1787_s12 }
 0x590   :  { %v679_v60 = vpop.permute.xlu2 %678 }
 0x591   :  { %v681_v0 = vadd.f32 %v679_v60, %v527_v57 }
 0x593   :  { %1440 = vtanh.f32 %v681_v0 }
 0x594   :  { %1442 = vpow2.f32 %v1334_v6 }
 0x599   :  { %v1441_v3 = vpop.eup %1440 }
 0x59a   :  { %685 = vrot.lane.b32.xlu1 %v1441_v3, %s1787_s12  ;;  %v1443_v9 = vpop.eup %1442 }
 0x59b   :  { %v657_v13 = vadd.f32 1.0, %v1443_v9 }
 0x59d   :  { %1444 = vrcp.f32 %v657_v13  ;;  %v669_v25 = vand.u32 2147483648, %v657_v13  ;;  %vm663_vm14 = vweird.f32 %v657_v13  ;;  %v667_v26 = vand.u32 2147483647, %v657_v13 }
 0x59f   :  { %v670_v28 = vor.u32 1.1754944e-38, %v669_v25  ;;  %vm668_vm0 = vcmp.eq.f32.partialorder %v667_v26, 8.507059e+37 }
 0x5a3   :  { %v1445_v18 = vpop.eup %1444 }
 0x5a4   :  { %v659_v20 = vmul.f32 %v1445_v18, %v657_v13  ;;  %vm664_vm13 = vweird.f32 %v1445_v18 }
 0x5a5   :  { %vm665_vm15 = vmor %vm663_vm14, %vm664_vm13 }
 0x5a6   :  { %v660_v22 = vsub.f32 1.0, %v659_v20 }
 0x5a8   :  { %v661_v23 = vmul.f32 %v1445_v18, %v660_v22 }
 0x5aa   :  { %v662_v24 = vadd.f32 %v1445_v18, %v661_v23 }
 0x5ac   :  { %v666_v27 = vsel %vm665_vm15, %v1445_v18, %v662_v24 }
 0x5ad   :  { %v671_v29 = vsel %vm668_vm0, %v670_v28, %v666_v27 }
 0x5ae   :  { %v683_v30 = vsub.f32 1.0, %v671_v29  ;;  %v689_v32 = vmul.f32 %v671_v29, %v1997_v63  ;;  %v2074_v63 = vld [vmem:[%s2196_s18 + $0x8] sm:$0xff] }
 0x5af   :  { %782 = vmatpush.bf16.msrb.mxu0 %v2074_v63 }
 0x5b3   :  { %783 = vmatpush.bf16.msrb.mxu0 %v2081_v41 }
 0x5b7   :  { %880 = vmatpush.bf16.msra.mxu0 %v1979_v54 }
 0x5bb   :  { %881 = vmatpush.bf16.msra.mxu0 %v1987_v61 }
 0x5e6   :  { %v592_v11 = vpop.permute.xlu2 %591 }
 0x5e7   :  { %v594_v12 = vmul.f32 %v592_v11, %v589_v10 }
 0x5e9   :  { %v2042_v15 = vadd.f32 %v599_v8, %v594_v12 }
 0x5eb   :  { %v691_v16 = vpack.c.bf16 %v2042_v15, %v2042_v15 }
 0x5ed   :  { %722 = vrot.lane.b32.xlu2 %v691_v16, %s1787_s12 }
 0x60c   :  { %v686_v31 = vpop.permute.xlu1 %685 }
 0x60d   :  { %v688_v33 = vmul.f32 %v686_v31, %v683_v30 }
 0x60f   :  { %v2062_v36 = vadd.f32 %v689_v32, %v688_v33 }
 0x611   :  { %v692_v37 = vpack.c.bf16 %v2062_v36, %v2062_v36 }
 0x613   :  { %1343 = vmatmul.msk.bf16.vlgmr.msra.gmra.mxu2 %vm315_vm1, %v692_v37 }
 0x614   :  { %979 = vmatpush.bf16.msra.mxu2 %v2052_v19 }
 0x618   :  { %980 = vmatpush.bf16.msra.mxu2 %v2055_v21 }
 0x647   :  { %v723_v38 = vpop.permute.xlu2 %722 }
 0x648   :  { %1352 = vmatmul.msk.bf16.vlgmr.msrb.gmra.mxu3 %vm315_vm1, %v723_v38 }
 0x649   :  { %998 = vmatpush.bf16.msrb.mxu3 %v2074_v63 }
 0x64d   :  { %999 = vmatpush.bf16.msrb.mxu3 %v2081_v41 }
 0x658   :  { %1364 = vmatmul.msk.bf16.vlgmr.msra.gmra.mxu3 %vm315_vm1, %v723_v38 }
 0x659   :  { %1096 = vmatpush.bf16.msra.mxu3 %v1979_v54 }
 0x65d   :  { %1097 = vmatpush.bf16.msra.mxu3 %v1987_v61 }
 0x696   :  { %v717_v39 = vpop.f32.mrf.mxu2 }
 0x69e   :  { %v719_v40 = vpop.f32.mrf.mxu2 }
 0x6cb   :  { %v748_v43 = vpop.f32.mrf.mxu3 }
 0x6cc   :  { %v749_v44 = vadd.f32 %v748_v43, %v717_v39 }
 0x6ce   :  { %v755_v45 = vadd.f32 %v2092_v42, %v749_v44 }
 0x6d0   :  { %v756_v46 = vmax.f32 %v755_v45, 0.0  ;;  %v789_v47 = vpack.c.bf16 %v755_v45, %v755_v45 }
 0x6d2   :  { %v757_v48 = vpack.c.bf16 %v756_v46, %v756_v46  ;;  %791 = vrot.lane.b32.xlu0 %v789_v47, %s1787_s12 }
 0x6d3   :  { %v750_v49 = vpop.f32.mrf.mxu3 }
 0x6d4   :  { %1361 = vmatmul.msk.bf16.vlgmr.msrb.gmra.mxu0 %vm315_vm1, %v757_v48 }
 0x6d5   :  { %1018 = vmatpush.bf16.msrb.mxu0 %v1969_v35 }
 0x6d9   :  { %1019 = vmatpush.bf16.msrb.mxu0 %v1983_v58 }
 0x6db   :  { %v831_v54 = vpop.f32.mrf.mxu3 }
 0x6dc   :  { %v832_v61 = vadd.f32 %v2008_v1, %v831_v54 }
 0x6de   :  { %856 = vrot.lane.b32.xlu1 %v832_v61, %s2211_s28 }
 0x6e3   :  { %v833_v50 = vpop.f32.mrf.mxu3 }
 0x6e4   :  { %1366 = vmatmul.msk.bf16.vlgmr.msra.gmra.mxu0 %vm315_vm1, %v692_v37 }
 0x6e5   :  { %1176 = vmatpush.bf16.msra.mxu0 %v2038_v4 }
 0x6e9   :  { %1177 = vmatpush.bf16.msra.mxu0 %v2047_v17 }
 0x744   :  { %v792_v51 = vpop.permute.xlu0 %791 }
 0x745   :  { %1362 = vmatmul.msk.bf16.vlgmr.msrb.gmra.mxu1 %vm315_vm1, %v792_v51  ;;  %1363 = vmatmul.msk.bf16.vlgmr.msrb.gmra.mxu2 %vm315_vm1, %v792_v51 }
 0x746   :  { %1044 = vmatpush.bf16.msrb.mxu2 %v1967_v34  ;;  %1031 = vmatpush.bf16.msrb.mxu1 %v1977_v53 }
 0x74a   :  { %1045 = vmatpush.bf16.msrb.mxu2 %v1985_v59  ;;  %1032 = vmatpush.bf16.msrb.mxu1 %v1989_v62 }
 0x750   :  { %v857_v17 = vpop.permute.xlu1 %856 }
 0x751   :  { %v2110_v35 = vpop.f32.mrf.mxu0 }
 0x759   :  { %v787_v58 = vpop.f32.mrf.mxu0 }
 0x761   :  { %v883_v52 = vpop.f32.mrf.mxu0 }
 0x762   :  { %v884_v55 = vadd.f32 %v2013_v2, %v883_v52 }
 0x764   :  { %931 = vrot.lane.b32.xlu1 %v884_v55, %s1786_s19  ;;  %888 = vrot.lane.b32.xlu2 %v884_v55, %s1787_s12 }
 0x769   :  { %v885_v57 = vpop.f32.mrf.mxu0 }
 0x7be   :  { %v889_v0 = vpop.permute.xlu2 %888 }
 0x7c2   :  { %v805_v60 = vpop.f32.mrf.mxu1 }
 0x7c3   :  { %v806_v34 = vadd.f32 %v805_v60, %v2027_v14 }
 0x7c5   :  { %v835_v53 = vadd.f32 %v832_v61, %v806_v34  ;;  %v891_v3 = vadd.f32 %v889_v0, %v806_v34 }
 0x7c7   :  { %v1365_v59 = vmul.f32 -1.442695, %v835_v53  ;;  %v1367_v4 = vmul.f32 -1.442695, %v891_v3 }
 0x7c8   :  { %v818_v62 = vpop.f32.mrf.mxu2 }
 0x7c9   :  { %1446 = vpow2.f32 %v1365_v59  ;;  %v819_v44 = vadd.f32 %v818_v62, %v2032_v56 }
 0x7ca   :  { %1448 = vpow2.f32 %v1367_v4  ;;  %v807_v5 = vpop.f32.mrf.mxu1 }
 0x7cb   :  { %v911_v61 = vadd.f32 %v889_v0, %v819_v44 }
 0x7cd   :  { %v1368_v50 = vmul.f32 -1.442695, %v911_v61 }
 0x7cf   :  { %v1447_v6 = vpop.eup %1446 }
 0x7d0   :  { %v1449_v7 = vpop.eup %1448  ;;  %v839_v9 = vadd.f32 1.0, %v1447_v6  ;;  %v820_v10 = vpop.f32.mrf.mxu2 }
 0x7d1   :  { %v895_v11 = vadd.f32 1.0, %v1449_v7 }
 0x7d2   :  { %1450 = vrcp.f32 %v839_v9  ;;  %v851_v22 = vand.u32 2147483648, %v839_v9  ;;  %v849_v25 = vand.u32 2147483647, %v839_v9  ;;  %vm845_vm4 = vweird.f32 %v839_v9 }
 0x7d3   :  { %1452 = vrcp.f32 %v895_v11  ;;  %v907_v23 = vand.u32 2147483648, %v895_v11  ;;  %v905_v27 = vand.u32 2147483647, %v895_v11  ;;  %vm901_vm5 = vweird.f32 %v895_v11 }
 0x7d4   :  { %v852_v30 = vor.u32 1.1754944e-38, %v851_v22  ;;  %vm850_vm8 = vcmp.eq.f32.partialorder %v849_v25, 8.507059e+37 }
 0x7d5   :  { %v908_v31 = vor.u32 1.1754944e-38, %v907_v23  ;;  %vm906_vm9 = vcmp.eq.f32.partialorder %v905_v27, 8.507059e+37 }
 0x7d6   :  { %v932_v39 = vpop.permute.xlu1 %931 }
 0x7d8   :  { %v1451_v8 = vpop.eup %1450 }
 0x7d9   :  { %v1453_v12 = vpop.eup %1452  ;;  %v841_v13 = vmul.f32 %v1451_v8, %v839_v9  ;;  %vm846_vm2 = vweird.f32 %v1451_v8 }
 0x7da   :  { %v897_v16 = vmul.f32 %v1453_v12, %v895_v11  ;;  %vm902_vm3 = vweird.f32 %v1453_v12  ;;  %vm847_vm6 = vmor %vm845_vm4, %vm846_vm2 }
 0x7db   :  { %v842_v18 = vsub.f32 1.0, %v841_v13  ;;  %vm903_vm7 = vmor %vm901_vm5, %vm902_vm3 }
 0x7dc   :  { %v898_v20 = vsub.f32 1.0, %v897_v16 }
 0x7dd   :  { %v843_v24 = vmul.f32 %v1451_v8, %v842_v18 }
 0x7de   :  { %v899_v26 = vmul.f32 %v1453_v12, %v898_v20 }
 0x7df   :  { %v844_v28 = vadd.f32 %v1451_v8, %v843_v24 }
 0x7e0   :  { %v900_v29 = vadd.f32 %v1453_v12, %v899_v26 }
 0x7e1   :  { %v848_v32 = vsel %vm847_vm6, %v1451_v8, %v844_v28 }
 0x7e2   :  { %v904_v33 = vsel %vm903_vm7, %v1453_v12, %v900_v29  ;;  %v853_v37 = vsel %vm850_vm8, %v852_v30, %v848_v32 }
 0x7e3   :  { %v909_v38 = vsel %vm906_vm9, %v908_v31, %v904_v33  ;;  %v859_v40 = vmul.f32 %v857_v17, %v853_v37  ;;  %v866_v11 = vsub.f32 1.0, %v853_v37  ;;  %v872_v12 = vmul.f32 %v853_v37, %v2042_v15 }
 0x7e4   :  { %v934_v43 = vmul.f32 %v932_v39, %v909_v38 }
 0x7e5   :  { %861 = vrot.lane.b32.xlu0 %v859_v40, %s2211_s28 }
 0x7e6   :  { %936 = vrot.lane.b32.xlu2 %v934_v43, %s2211_s28 }
 0x840   :  { %v937_v45 = vpop.permute.xlu2 %936 }
 0x841   :  { %v939_v46 = vadd.f32 %v937_v45, %v819_v44 }
 0x843   :  { %1454 = vtanh.f32 %v939_v46 }
 0x849   :  { %v1455_v47 = vpop.eup %1454 }
 0x84a   :  { %943 = vrot.lane.b32.xlu1 %v1455_v47, %s1787_s12 }
 0x857   :  { %v862_v48 = vpop.permute.xlu0 %861 }
 0x858   :  { %v864_v49 = vadd.f32 %v862_v48, %v806_v34 }
 0x85a   :  { %1456 = vtanh.f32 %v864_v49 }
 0x85b   :  { %1458 = vpow2.f32 %v1368_v50 }
 0x860   :  { %v1457_v54 = vpop.eup %1456 }
 0x861   :  { %868 = vrot.lane.b32.xlu0 %v1457_v54, %s1787_s12  ;;  %v1459_v51 = vpop.eup %1458 }
 0x862   :  { %v915_v58 = vadd.f32 1.0, %v1459_v51 }
 0x864   :  { %1460 = vrcp.f32 %v915_v58  ;;  %v927_v3 = vand.u32 2147483648, %v915_v58  ;;  %vm921_vm11 = vweird.f32 %v915_v58  ;;  %v925_v59 = vand.u32 2147483647, %v915_v58 }
 0x866   :  { %v928_v4 = vor.u32 1.1754944e-38, %v927_v3  ;;  %vm926_vm13 = vcmp.eq.f32.partialorder %v925_v59, 8.507059e+37 }
 0x86a   :  { %v1461_v52 = vpop.eup %1460 }
 0x86b   :  { %v917_v55 = vmul.f32 %v1461_v52, %v915_v58  ;;  %vm922_vm10 = vweird.f32 %v1461_v52 }
 0x86c   :  { %vm923_vm12 = vmor %vm921_vm11, %vm922_vm10  ;;  %vm1229_vm11 = vcmask 15360  }
 0x86d   :  { %v918_v57 = vsub.f32 1.0, %v917_v55 }
 0x86f   :  { %v919_v60 = vmul.f32 %v1461_v52, %v918_v57 }
 0x871   :  { %v920_v53 = vadd.f32 %v1461_v52, %v919_v60 }
 0x873   :  { %v924_v34 = vsel %vm923_vm12, %v1461_v52, %v920_v53  ;;  %vm1231_vm12 = vcmask 31744  }
 0x874   :  { %v929_v62 = vsel %vm926_vm13, %v928_v4, %v924_v34  ;;  %vm1233_vm13 = vcmask 41984  }
 0x875   :  { %v941_v0 = vsub.f32 1.0, %v929_v62  ;;  %v947_v6 = vmul.f32 %v929_v62, %v2062_v36 }
 0x8bc   :  { %v944_v5 = vpop.permute.xlu1 %943 }
 0x8bd   :  { %v946_v7 = vmul.f32 %v944_v5, %v941_v0 }
 0x8bf   :  { %v2122_v9 = vadd.f32 %v947_v6, %v946_v7 }
 0x8c1   :  { %v950_v10 = vpack.c.bf16 %v2122_v9, %v2122_v9 }
 0x8c3   :  { %1369 = vmatmul.msk.bf16.vlgmr.msra.gmra.mxu1 %vm315_vm1, %v950_v10 }
 0x8c4   :  { %1195 = vmatpush.bf16.msra.mxu1 %v2052_v19 }
 0x8c8   :  { %1196 = vmatpush.bf16.msra.mxu1 %v2055_v21 }
 0x8d3   :  { %v869_v8 = vpop.permute.xlu0 %868 }
 0x8d4   :  { %v871_v13 = vmul.f32 %v869_v8, %v866_v11 }
 0x8d6   :  { %v2130_v16 = vadd.f32 %v872_v12, %v871_v13 }
 0x8d8   :  { %v949_v36 = vpack.c.bf16 %v2130_v16, %v2130_v16 }
 0x8da   :  { %968 = vrot.lane.b32.xlu2 %v949_v36, %s1787_s12 }
 0x934   :  { %v969_v17 = vpop.permute.xlu2 %968 }
 0x935   :  { %1370 = vmatmul.msk.bf16.vlgmr.msra.gmra.mxu2 %vm315_vm1, %v969_v17 }
 0x936   :  { %1214 = vmatpush.bf16.msra.mxu2 %v2074_v63 }
 0x93a   :  { %1215 = vmatpush.bf16.msra.mxu2 %v2081_v41 }
 0x940   :  { %v963_v19 = vpop.f32.mrf.mxu1 }
 0x945   :  { %1374 = vmatmul.msk.bf16.vlgmr.msrb.gmra.mxu2 %vm315_vm1, %v969_v17 }
 0x948   :  { %v965_v21 = vpop.f32.mrf.mxu1 }
 0x9b8   :  { %v982_v15 = vpop.f32.mrf.mxu2 }
 0x9b9   :  { %v983_v18 = vadd.f32 %v982_v15, %v963_v19 }
 0x9bb   :  { %v986_v20 = vadd.f32 %v2092_v42, %v983_v18 }
 0x9bd   :  { %v987_v22 = vmax.f32 %v986_v20, 0.0  ;;  %v1005_v23 = vpack.c.bf16 %v986_v20, %v986_v20  ;;  %v1429_v20 = vld [vmem:[%s2214_s27] ss:$0 sm:$0xff] }
 0x9bf   :  { %v988_v24 = vpack.c.bf16 %v987_v22, %v987_v22  ;;  %1007 = vrot.lane.b32.xlu0 %v1005_v23, %s1787_s12 }
 0x9c0   :  { %v984_v25 = vpop.f32.mrf.mxu2 }
 0x9c1   :  { %1371 = vmatmul.msk.bf16.vlgmr.msrb.gmra.mxu3 %vm315_vm1, %v988_v24 }
 0x9c8   :  { %v1047_v26 = vpop.f32.mrf.mxu2 }
 0x9c9   :  { %v1048_v63 = vadd.f32 %v2008_v1, %v1047_v26 }
 0x9cb   :  { %1072 = vrot.lane.b32.xlu1 %v1048_v63, %s2211_s28 }
 0x9d0   :  { %v1049_v41 = vpop.f32.mrf.mxu2 }
 0x9d1   :  { %1376 = vmatmul.msk.bf16.vlgmr.msra.gmra.mxu3 %vm315_vm1, %v950_v10 }
 0xa31   :  { %v1008_v27 = vpop.permute.xlu0 %1007 }
 0xa32   :  { %1372 = vmatmul.msk.bf16.vlgmr.msrb.gmra.mxu0 %vm315_vm1, %v1008_v27  ;;  %1373 = vmatmul.msk.bf16.vlgmr.msrb.gmra.mxu1 %vm315_vm1, %v1008_v27 }
 0xa3d   :  { %v1073_v5 = vpop.permute.xlu1 %1072 }
 0xa44   :  { %v2147_v28 = vpop.f32.mrf.mxu3 }
 0xa45   :  { %v1002_v22 = vadd.f32 %v1429_v20, %v2147_v28 }
 0xa4c   :  { %v1003_v29 = vpop.f32.mrf.mxu3 }
 0xa54   :  { %v1099_v30 = vpop.f32.mrf.mxu3 }
 0xa55   :  { %v1100_v31 = vadd.f32 %v2013_v2, %v1099_v30 }
 0xa57   :  { %1147 = vrot.lane.b32.xlu0 %v1100_v31, %s1786_s19  ;;  %1104 = vrot.lane.b32.xlu2 %v1100_v31, %s1787_s12 }
 0xa5c   :  { %v1101_v1 = vpop.f32.mrf.mxu3 }
 0xaaf   :  { %v1021_v32 = vpop.f32.mrf.mxu0  ;;  %v1034_v33 = vpop.f32.mrf.mxu1 }
 0xab0   :  { %v1022_v37 = vadd.f32 %v1021_v32, %v2027_v14  ;;  %v1035_v13 = vadd.f32 %v1034_v33, %v2032_v56 }
 0xab1   :  { %v2153_v38 = vpop.permute.xlu2 %1104 }
 0xab2   :  { %v1051_v39 = vadd.f32 %v1048_v63, %v1022_v37  ;;  %v1107_v40 = vadd.f32 %v2153_v38, %v1022_v37  ;;  %v1127_v56 = vadd.f32 %v2153_v38, %v1035_v13 }
 0xab4   :  { %v1375_v43 = vmul.f32 -1.442695, %v1051_v39  ;;  %v1377_v44 = vmul.f32 -1.442695, %v1107_v40  ;;  %v1378_v23 = vmul.f32 -1.442695, %v1127_v56 }
 0xab6   :  { %1462 = vpow2.f32 %v1375_v43 }
 0xab7   :  { %1464 = vpow2.f32 %v1377_v44  ;;  %v1023_v45 = vpop.f32.mrf.mxu0  ;;  %v1036_v2 = vpop.f32.mrf.mxu1 }
 0xabc   :  { %v1463_v46 = vpop.eup %1462 }
 0xabd   :  { %v1465_v47 = vpop.eup %1464  ;;  %v1055_v48 = vadd.f32 1.0, %v1463_v46 }
 0xabe   :  { %v1111_v49 = vadd.f32 1.0, %v1465_v47 }
 0xabf   :  { %1466 = vrcp.f32 %v1055_v48  ;;  %v1067_v52 = vand.u32 2147483648, %v1055_v48  ;;  %v1065_v60 = vand.u32 2147483647, %v1055_v48  ;;  %vm1061_vm0 = vweird.f32 %v1055_v48 }
 0xac0   :  { %1468 = vrcp.f32 %v1111_v49  ;;  %v1123_v55 = vand.u32 2147483648, %v1111_v49  ;;  %v1121_v3 = vand.u32 2147483647, %v1111_v49  ;;  %vm1117_vm2 = vweird.f32 %v1111_v49 }
 0xac1   :  { %v1068_v4 = vor.u32 1.1754944e-38, %v1067_v52  ;;  %vm1066_vm5 = vcmp.eq.f32.partialorder %v1065_v60, 8.507059e+37 }
 0xac2   :  { %v1124_v62 = vor.u32 1.1754944e-38, %v1123_v55  ;;  %vm1122_vm6 = vcmp.eq.f32.partialorder %v1121_v3, 8.507059e+37 }
 0xac5   :  { %v1467_v54 = vpop.eup %1466 }
 0xac6   :  { %v1469_v61 = vpop.eup %1468  ;;  %v1057_v14 = vmul.f32 %v1467_v54, %v1055_v48  ;;  %vm1062_vm14 = vweird.f32 %v1467_v54 }
 0xac7   :  { %v1113_v50 = vmul.f32 %v1469_v61, %v1111_v49  ;;  %vm1118_vm15 = vweird.f32 %v1469_v61  ;;  %vm1063_vm3 = vmor %vm1061_vm0, %vm1062_vm14 }
 0xac8   :  { %v1058_v51 = vsub.f32 1.0, %v1057_v14  ;;  %vm1119_vm4 = vmor %vm1117_vm2, %vm1118_vm15 }
 0xac9   :  { %v1114_v58 = vsub.f32 1.0, %v1113_v50  ;;  %v1148_v10 = vpop.permute.xlu0 %1147 }
 0xaca   :  { %v1059_v57 = vmul.f32 %v1467_v54, %v1058_v51 }
 0xacb   :  { %v1115_v53 = vmul.f32 %v1469_v61, %v1114_v58 }
 0xacc   :  { %v1060_v59 = vadd.f32 %v1467_v54, %v1059_v57 }
 0xacd   :  { %v1116_v34 = vadd.f32 %v1469_v61, %v1115_v53 }
 0xace   :  { %v1064_v0 = vsel %vm1063_vm3, %v1467_v54, %v1060_v59 }
 0xacf   :  { %v1120_v6 = vsel %vm1119_vm4, %v1469_v61, %v1116_v34  ;;  %v1069_v7 = vsel %vm1066_vm5, %v1068_v4, %v1064_v0 }
 0xad0   :  { %v1125_v11 = vsel %vm1122_vm6, %v1124_v62, %v1120_v6  ;;  %v1075_v8 = vmul.f32 %v1073_v5, %v1069_v7  ;;  %v1082_v44 = vsub.f32 1.0, %v1069_v7  ;;  %v1088_v2 = vmul.f32 %v1069_v7, %v2130_v16 }
 0xad1   :  { %v1150_v12 = vmul.f32 %v1148_v10, %v1125_v11 }
 0xad2   :  { %1077 = vrot.lane.b32.xlu1 %v1075_v8, %s2211_s28 }
 0xad3   :  { %1152 = vrot.lane.b32.xlu2 %v1150_v12, %s2211_s28  ;;  %s1788_s28 = smov 2  }
 0xb2d   :  { %v1153_v36 = vpop.permute.xlu2 %1152 }
 0xb2e   :  { %v1155_v17 = vadd.f32 %v1153_v36, %v1035_v13 }
 0xb30   :  { %1470 = vtanh.f32 %v1155_v17 }
 0xb36   :  { %v1471_v19 = vpop.eup %1470 }
 0xb37   :  { %1159 = vrot.lane.b32.xlu1 %v1471_v19, %s1787_s12 }
 0xb44   :  { %v1078_v21 = vpop.permute.xlu1 %1077 }
 0xb45   :  { %v1080_v15 = vadd.f32 %v1078_v21, %v1022_v37 }
 0xb47   :  { %1472 = vtanh.f32 %v1080_v15 }
 0xb48   :  { %1474 = vpow2.f32 %v1378_v23 }
 0xb4d   :  { %v1473_v18 = vpop.eup %1472 }
 0xb4e   :  { %1084 = vrot.lane.b32.xlu0 %v1473_v18, %s1787_s12  ;;  %v1475_v24 = vpop.eup %1474 }
 0xb4f   :  { %v1131_v25 = vadd.f32 1.0, %v1475_v24 }
 0xb51   :  { %1476 = vrcp.f32 %v1131_v25  ;;  %v1143_v30 = vand.u32 2147483648, %v1131_v25  ;;  %vm1137_vm8 = vweird.f32 %v1131_v25  ;;  %v1141_v31 = vand.u32 2147483647, %v1131_v25 }
 0xb53   :  { %v1144_v1 = vor.u32 1.1754944e-38, %v1143_v30  ;;  %vm1142_vm10 = vcmp.eq.f32.partialorder %v1141_v31, 8.507059e+37 }
 0xb56   :  { %1222 = vrot.lane.b32.xlu0 %v1002_v22, %s1788_s28 }
 0xb57   :  { %v1477_v26 = vpop.eup %1476 }
 0xb58   :  { %v1133_v63 = vmul.f32 %v1477_v26, %v1131_v25  ;;  %vm1138_vm7 = vweird.f32 %v1477_v26 }
 0xb59   :  { %vm1139_vm9 = vmor %vm1137_vm8, %vm1138_vm7 }
 0xb5a   :  { %v1134_v41 = vsub.f32 1.0, %v1133_v63 }
 0xb5c   :  { %v1135_v27 = vmul.f32 %v1477_v26, %v1134_v41 }
 0xb5e   :  { %v1136_v29 = vadd.f32 %v1477_v26, %v1135_v27 }
 0xb60   :  { %v1140_v28 = vsel %vm1139_vm9, %v1477_v26, %v1136_v29 }
 0xb61   :  { %v1145_v32 = vsel %vm1142_vm10, %v1144_v1, %v1140_v28 }
 0xb62   :  { %v1157_v33 = vsub.f32 1.0, %v1145_v32  ;;  %v1163_v38 = vmul.f32 %v1145_v32, %v2122_v9 }
 0xba9   :  { %v1160_v37 = vpop.permute.xlu1 %1159 }
 0xbaa   :  { %v1162_v39 = vmul.f32 %v1160_v37, %v1157_v33 }
 0xbac   :  { %v1164_v40 = vadd.f32 %v1163_v38, %v1162_v39 }
 0xbae   :  { %v1166_v43 = vpack.c.bf16 %v1164_v40, %v1164_v40 }
 0xbb0   :  { %1379 = vmatmul.msk.bf16.vlgmr.msra.gmra.mxu0 %vm315_vm1, %v1166_v43 }
 0xbc0   :  { %v1085_v45 = vpop.permute.xlu0 %1084 }
 0xbc1   :  { %v1087_v46 = vmul.f32 %v1085_v45, %v1082_v44 }
 0xbc3   :  { %v1089_v47 = vadd.f32 %v1088_v2, %v1087_v46 }
 0xbc5   :  { %v1165_v48 = vpack.c.bf16 %v1089_v47, %v1089_v47 }
 0xbc7   :  { %1184 = vrot.lane.b32.xlu2 %v1165_v48, %s1787_s12 }
 0xbc8   :  { %v1223_v60 = vpop.permute.xlu0 %1222 }
 0xc21   :  { %v1185_v49 = vpop.permute.xlu2 %1184 }
 0xc22   :  { %1380 = vmatmul.msk.bf16.vlgmr.msra.gmra.mxu1 %vm315_vm1, %v1185_v49 }
 0xc2d   :  { %v1179_v54 = vpop.f32.mrf.mxu0 }
 0xc35   :  { %v1181_v61 = vpop.f32.mrf.mxu0 }
 0xc9f   :  { %v1198_v9 = vpop.f32.mrf.mxu1 }
 0xca0   :  { %v1199_v14 = vadd.f32 %v1198_v9, %v1179_v54 }
 0xca2   :  { %v1202_v50 = vadd.f32 %v2092_v42, %v1199_v14  ;;  %v786_v42 = vadd.f32 %v1429_v20, %v2110_v35 }
 0xca4   :  { %v1203_v51 = vmax.f32 %v1202_v50, 0.0  ;;  %v1230_v53 = vsel %vm1229_vm11, %v786_v42, %v1223_v60 }
 0xca6   :  { %v1204_v58 = vpack.c.bf16 %v1203_v51, %v1203_v51 }
 0xca7   :  { %v1200_v52 = vpop.f32.mrf.mxu1 }
 0xca8   :  { %1381 = vmatmul.msk.bf16.vlgmr.msra.gmra.mxu2 %vm315_vm1, %v1204_v58 }
 0xd2b   :  { %v1217_v16 = vpop.f32.mrf.mxu2 }
 0xd2c   :  { %v1218_v55 = vadd.f32 %v1429_v20, %v1217_v16 }
 0xd2e   :  { %1226 = vrot.lane.b32.xlu1 %v1218_v55, %s1772_s29 }
 0xd33   :  { %v1219_v57 = vpop.f32.mrf.mxu2 }
 0xda0   :  { %v1227_v3 = vpop.permute.xlu1 %1226 }
 0xda1   :  { %v1232_v59 = vsel %vm1231_vm12, %v1230_v53, %v1227_v3 }
 0xda2   :  { %1234 = vst.msk [vmem:[#allocation21] sm:$0x3] %vm1233_vm13, %v1232_v59 }
 0xda3   :  { %1245 = dma.vmem_to_hbm [thread:$0]  %s1241_s24, 32, %s1243_s21, [#allocation4]  }
 0xda4   :  { %1768 = dma.done.wait [#allocation4], 32  }
 0xda5   :  { %1769 = vsyncadd [#allocation4], 4294967264 }
 0xda6   :  { %1250 = vsyncpa [#allocation3], 1 }
 0xda7   :  { %1251 = vsyncpa [#allocation8], 1 }
 0xda8   :  { %1252 = vsyncpa [#allocation11], 1 }
 0xda9   :  { %1253 = vsyncpa [#allocation14], 1 }
 0xdaa   :  { %1254 = vsyncpa [#allocation17], 1 }
 0xdab   :  { %1255 = vsyncpa [#allocation20], 1 }
 0xdac   :  { %1256 = vsyncpa [#allocation4], 1 }
 0xdad   :  { %1257 = vsyncpa [#allocation5], 1 }

</bundles_post_ra>
